<compile_context>
chip_gen: v7x
topology: tpu7x:2x2x1
jax: 0.10.0
libtpu: 0.0.40
codegen_flags: <defaults>
</compile_context>

<pallas_src>
import functools
import math

import numpy as np
import jax
import jax.numpy as jnp
from jax import lax
from jax.experimental import pallas as pl
from jax.experimental.pallas import tpu as pltpu

LANE = 128  # lane-dense padding for the hidden / feature axis


# ----------------------------------------------------------------------------
# In-kernel normalization helpers (operate on loaded jnp values)
# ----------------------------------------------------------------------------

def _bn_rows(x, gamma, beta, n_rows, eps=1e-5):
    """BatchNorm1d (training mode): per-column batch statistics over the node axis."""
    inv_n = 1.0 / float(n_rows)
    mean = jnp.sum(x, axis=0, keepdims=True) * inv_n
    var = jnp.sum((x - mean) ** 2, axis=0, keepdims=True) * inv_n
    return (x - mean) * lax.rsqrt(var + eps) * gamma + beta


def _ln_cols(x, gamma, beta, d_real, eps=1e-5):
    """LayerNorm over the zero-padded feature axis; stats over the d_real real columns.

    Pad columns are exactly zero, so sums over all 128 lanes divided by d_real give
    the exact real-column moments; gamma/beta pads are zero so pad columns stay zero.
    """
    inv_d = 1.0 / float(d_real)
    mean = jnp.sum(x, axis=-1, keepdims=True) * inv_d
    ex2 = jnp.sum(x * x, axis=-1, keepdims=True) * inv_d
    var = jnp.maximum(ex2 - mean * mean, 0.0)
    return (x - mean) * lax.rsqrt(var + eps) * gamma + beta


# ----------------------------------------------------------------------------
# Pallas kernels
# ----------------------------------------------------------------------------

def _full_spec(shape):
    # whole-array block (block dims equal full array dims), grid=(1,)
    return pl.BlockSpec(shape, lambda *_: (0,) * len(shape))


def _featurizer_kernel(feats_ref, bng_ref, bnb_ref, w1_ref, b1_ref, w2_ref, b2_ref,
                       lng_ref, lnb_ref, o_ref, *, n_nodes, hidden):
    """Fused sum_f LayerNorm(MLP(BatchNorm1d(feature_f))) for all features."""
    acc = jnp.zeros(o_ref.shape, jnp.float32)
    num_feats = feats_ref.shape[0]
    for f in range(num_feats):                               # static unroll
        h = _bn_rows(feats_ref[f], bng_ref[f], bnb_ref[f], n_nodes)
        h = jnp.dot(h, w1_ref[f], preferred_element_type=jnp.float32) + b1_ref[f]
        h = jnp.maximum(h, 0.0)
        h = jnp.dot(h, w2_ref[f], preferred_element_type=jnp.float32) + b2_ref[f]
        acc = acc + _ln_cols(h, lng_ref[f], lnb_ref[f], hidden)
    o_ref[...] = acc


def _gps_layer_kernel(x_ref, adj_ref, gbias_ref,
                      gin_w_ref, gin_b_ref,
                      wi_ref, bi_ref, wo_ref, bo_ref,
                      mlp_w_ref, mlp_b_ref,
                      bn_g_ref, bn_b_ref,
                      o_ref, *, n_nodes, hidden, heads):
    """One fully-fused GPSConv layer: GIN local branch, masked multi-head
    self-attention global branch, feed-forward MLP, and all three BatchNorms."""
    x = x_ref[...]                                            # [N, 128]

    # ---- local branch: GINConv(nn) + residual + BN1 ----
    agg = jnp.dot(adj_ref[...], x, preferred_element_type=jnp.float32)
    h = x + agg                                               # (1 + eps)*x + sum_j x_j, eps=0
    h = jnp.maximum(jnp.dot(h, gin_w_ref[0], preferred_element_type=jnp.float32)
                    + gin_b_ref[0], 0.0)
    h = jnp.dot(h, gin_w_ref[1], preferred_element_type=jnp.float32) + gin_b_ref[1]
    h_local = _bn_rows(h + x, bn_g_ref[0], bn_b_ref[0], n_nodes)

    # ---- global branch: multi-head self-attention with block-diagonal graph mask
    #      (equivalent to to_dense_batch + MultiheadAttention(key_padding_mask)) ----
    hd = hidden // heads
    scale = 1.0 / math.sqrt(hd)
    qkv = jnp.dot(x, wi_ref[...], preferred_element_type=jnp.float32) + bi_ref[...]  # [N, 3*hidden]
    q = qkv[:, :hidden]
    k = qkv[:, hidden:2 * hidden]
    v = qkv[:, 2 * hidden:]
    gbias = gbias_ref[...]                                    # [N, N], 0 same-graph / -1e30 cross
    outs = []
    for h_i in range(heads):                                  # static unroll (heads=4)
        qh = q[:, h_i * hd:(h_i + 1) * hd] * scale
        kh = k[:, h_i * hd:(h_i + 1) * hd]
        vh = v[:, h_i * hd:(h_i + 1) * hd]
        s = lax.dot_general(qh, kh, (((1,), (1,)), ((), ())),
                            preferred_element_type=jnp.float32)            # [N, N]
        s = s + gbias
        s = s - jnp.max(s, axis=-1, keepdims=True)
        p = jnp.exp(s)
        p = p * pl.reciprocal(jnp.sum(p, axis=-1, keepdims=True), approx=True)
        outs.append(jnp.dot(p, vh, preferred_element_type=jnp.float32))    # [N, hd]
    attn = jnp.concatenate(outs, axis=-1)                     # [N, hidden]
    attn = jnp.dot(attn, wo_ref[...], preferred_element_type=jnp.float32) + bo_ref[...]
    h_attn = _bn_rows(attn + x, bn_g_ref[1], bn_b_ref[1], n_nodes)

    # ---- combine + feed-forward MLP + residual + BN3 ----
    out = h_local + h_attn
    f = jnp.maximum(jnp.dot(out, mlp_w_ref[0], preferred_element_type=jnp.float32)
                    + mlp_b_ref[0], 0.0)
    f = jnp.dot(f, mlp_w_ref[1], preferred_element_type=jnp.float32) + mlp_b_ref[1]
    o_ref[...] = _bn_rows(out + f, bn_g_ref[2], bn_b_ref[2], n_nodes)


def _pool_cls_kernel(pool_ref, x_ref, w_ref, b_ref, o_ref):
    """Fused global_add_pool + classification head (output padded to 128 lanes)."""
    pooled = jnp.dot(pool_ref[...], x_ref[...], preferred_element_type=jnp.float32)
    o_ref[...] = jnp.dot(pooled, w_ref[...], preferred_element_type=jnp.float32) + b_ref[...]


# ----------------------------------------------------------------------------
# pallas_call wrappers
# ----------------------------------------------------------------------------

def pallas_featurizer(feats, fp, n_nodes, hidden):
    args = (feats, fp["bn_g"], fp["bn_b"], fp["w1"], fp["b1"],
            fp["w2"], fp["b2"], fp["ln_g"], fp["ln_b"])
    return pl.pallas_call(
        functools.partial(_featurizer_kernel, n_nodes=n_nodes, hidden=hidden),
        out_shape=jax.ShapeDtypeStruct((n_nodes, LANE), jnp.float32),
        grid=(1,),
        in_specs=[_full_spec(a.shape) for a in args],
        out_specs=_full_spec((n_nodes, LANE)),
    )(*args)


def pallas_gps_layer(x, adj, gbias, lp, n_nodes, hidden, heads):
    args = (x, adj, gbias,
            lp["gin_w"], lp["gin_b"],
            lp["attn_wi"], lp["attn_bi"], lp["attn_wo"], lp["attn_bo"],
            lp["mlp_w"], lp["mlp_b"],
            lp["bn_g"], lp["bn_b"])
    return pl.pallas_call(
        functools.partial(_gps_layer_kernel, n_nodes=n_nodes, hidden=hidden, heads=heads),
        out_shape=jax.ShapeDtypeStruct((n_nodes, LANE), jnp.float32),
        grid=(1,),
        in_specs=[_full_spec(a.shape) for a in args],
        out_specs=_full_spec((n_nodes, LANE)),
        compiler_params=pltpu.CompilerParams(dimension_semantics=("arbitrary",)),
    )(*args)


def pallas_pool_cls(pool_mat, x, w, b):
    args = (pool_mat, x, w, b)
    num_graphs = pool_mat.shape[0]
    return pl.pallas_call(
        _pool_cls_kernel,
        out_shape=jax.ShapeDtypeStruct((num_graphs, LANE), jnp.float32),
        grid=(1,),
        in_specs=[_full_spec(a.shape) for a in args],
        out_specs=_full_spec((num_graphs, LANE)),
    )(*args)


# ----------------------------------------------------------------------------
# Parameter init (zero-padded to lane-dense layouts)
# ----------------------------------------------------------------------------

def _init_linear_padded(key, din, dout, rows_pad, cols_pad):
    kw, kb = jax.random.split(key)
    bound = 1.0 / math.sqrt(din)
    w = jax.random.uniform(kw, (din, dout), jnp.float32, -bound, bound)
    b = jax.random.uniform(kb, (dout,), jnp.float32, -bound, bound)
    wp = jnp.zeros((rows_pad, cols_pad), jnp.float32).at[:din, :dout].set(w)
    bp = jnp.zeros((1, cols_pad), jnp.float32).at[0, :dout].set(b)
    return wp, bp


def _pad_row(v, cols=LANE):
    v = jnp.asarray(v, jnp.float32).reshape(-1)
    return jnp.zeros((1, cols), jnp.float32).at[0, :v.shape[0]].set(v)


def init_params(key, num_layers, hidden, feature_dims):
    fz = {k: [] for k in ("bn_g", "bn_b", "w1", "b1", "w2", "b2", "ln_g", "ln_b")}
    for _, dim in feature_dims.items():
        key, k1, k2 = jax.random.split(key, 3)
        w1, b1 = _init_linear_padded(k1, dim, hidden, LANE, LANE)
        w2, b2 = _init_linear_padded(k2, hidden, hidden, LANE, LANE)
        fz["bn_g"].append(_pad_row(jnp.ones(dim)))
        fz["bn_b"].append(_pad_row(jnp.zeros(dim)))
        fz["w1"].append(w1); fz["b1"].append(b1)
        fz["w2"].append(w2); fz["b2"].append(b2)
        fz["ln_g"].append(_pad_row(jnp.ones(hidden)))
        fz["ln_b"].append(_pad_row(jnp.zeros(hidden)))
    featurizer = {k: jnp.stack(v, axis=0) for k, v in fz.items()}

    layers = []
    for _ in range(num_layers):
        key, kg1, kg2, ki, ko, km1, km2 = jax.random.split(key, 7)
        gw1, gb1 = _init_linear_padded(kg1, hidden, hidden, LANE, LANE)       # GIN nn
        gw2, gb2 = _init_linear_padded(kg2, hidden, hidden, LANE, LANE)
        wi, bi = _init_linear_padded(ki, hidden, 3 * hidden, LANE, 3 * hidden)  # MHA in_proj
        wo, bo = _init_linear_padded(ko, hidden, hidden, hidden, LANE)          # MHA out_proj
        mw1, mb1 = _init_linear_padded(km1, hidden, 2 * hidden, LANE, LANE)     # GPS feed-forward
        mw2, mb2 = _init_linear_padded(km2, 2 * hidden, hidden, LANE, LANE)
        layers.append(dict(
            gin_w=jnp.stack([gw1, gw2]), gin_b=jnp.stack([gb1, gb2]),
            attn_wi=wi, attn_bi=bi, attn_wo=wo, attn_bo=bo,
            mlp_w=jnp.stack([mw1, mw2]), mlp_b=jnp.stack([mb1, mb2]),
            bn_g=jnp.stack([_pad_row(jnp.ones(hidden))] * 3),
            bn_b=jnp.stack([_pad_row(jnp.zeros(hidden))] * 3),
        ))

    key, kc = jax.random.split(key)
    cw, cb = _init_linear_padded(kc, hidden, 1, LANE, LANE)
    return dict(featurizer=featurizer, layers=layers, cls_w=cw, cls_b=cb)


# ----------------------------------------------------------------------------
# GraphDiscriminator forward
# ----------------------------------------------------------------------------

@functools.partial(jax.jit, static_argnames=("num_graphs", "hidden", "heads", "feature_names"))
def graph_discriminator_forward(params, features, adj, pool_mat, graph_bias, batch_enum,
                                flip_key, *, num_graphs, hidden, heads, feature_names):
    n_nodes = adj.shape[0]

    # plain-JAX glue: eig_vecs random sign flips + zero-pad/stack raw features
    stacked = []
    for name in feature_names:
        feat = features[name].astype(jnp.float32)
        if name == "eig_vecs":
            flips = (2 * jax.random.randint(flip_key, (num_graphs, feat.shape[-1]), 0, 2)
                     - 1).astype(jnp.float32)
            feat = feat * flips[batch_enum]
        stacked.append(jnp.zeros((n_nodes, LANE), jnp.float32).at[:, :feat.shape[-1]].set(feat))
    feats = jnp.stack(stacked, axis=0)                        # [F, N, 128]

    # featurizers: sum_f LayerNorm(MLP(BatchNorm1d(feature_f)))  (one kernel)
    x = pallas_featurizer(feats, params["featurizer"], n_nodes, hidden)

    # GPSConv layers (one fused kernel per layer)
    for lp in params["layers"]:
        x = pallas_gps_layer(x, adj, graph_bias, lp, n_nodes, hidden, heads)

    # global_add_pool + classification head (one kernel, lane-padded output)
    logits_pad = pallas_pool_cls(pool_mat, x, params["cls_w"], params["cls_b"])
    return logits_pad[:, :1]                                  # [num_graphs, 1]


# ----------------------------------------------------------------------------
# Main
# ----------------------------------------------------------------------------

if __name__ == "__main__":
    num_layers = 2
    hidden_dim = 32
    heads = 4
    feature_dims = {"node_feat": 6, "eig_vecs": 4}

    # a small batch of 2 graphs with different sizes
    graph_sizes = [7, 9]
    num_graphs = len(graph_sizes)
    n_nodes = sum(graph_sizes)
    batch_np = np.concatenate([np.full(s, g, np.int32)
                               for g, s in enumerate(graph_sizes)])

    # bidirectional ring edges inside each graph
    src, dst = [], []
    off = 0
    for s in graph_sizes:
        for i in range(s):
            j = (i + 1) % s
            src += [off + i, off + j]
            dst += [off + j, off + i]
        off += s
    edge_index = np.stack([np.array(src, np.int32), np.array(dst, np.int32)])

    # dense adjacency (messages src -> dst), per-graph pooling matrix, and the
    # block-diagonal attention bias (0 = same graph, -1e30 = other graph), which is
    # equivalent to to_dense_batch + key_padding_mask in the reference module.
    adj_np = np.zeros((n_nodes, n_nodes), np.float32)
    np.add.at(adj_np, (edge_index[1], edge_index[0]), 1.0)
    pool_np = np.zeros((num_graphs, n_nodes), np.float32)
    pool_np[batch_np, np.arange(n_nodes)] = 1.0
    gbias_np = np.where(batch_np[:, None] == batch_np[None, :], 0.0, -1e30).astype(np.float32)

    key = jax.random.PRNGKey(0)
    key, kp, kf1, kf2, kflip = jax.random.split(key, 5)
    params = init_params(kp, num_layers, hidden_dim, feature_dims)
    features = {
        "node_feat": jax.random.normal(kf1, (n_nodes, feature_dims["node_feat"]), jnp.float32),
        "eig_vecs": jax.random.normal(kf2, (n_nodes, feature_dims["eig_vecs"]), jnp.float32),
    }

    out = graph_discriminator_forward(
        params, features,
        jnp.asarray(adj_np), jnp.asarray(pool_np), jnp.asarray(gbias_np),
        jnp.asarray(batch_np), kflip,
        num_graphs=num_graphs, hidden=hidden_dim, heads=heads,
        feature_names=tuple(feature_dims.keys()),
    )
    out = jax.block_until_ready(out)
    assert out.shape == (num_graphs, 1) and out.dtype == jnp.float32
    assert bool(jnp.all(jnp.isfinite(out)))
    print("KERNEL_OK")
</pallas_src>

<mosaic_0001>
module attributes {stable_mosaic.version = 11 : i64} {
  func.func @_pool_cls_kernel(%arg0: i32, %arg1: memref<2x16xf32, #tpu.memory_space<vmem>>, %arg2: memref<16x128xf32, #tpu.memory_space<vmem>>, %arg3: memref<128x128xf32, #tpu.memory_space<vmem>>, %arg4: memref<1x128xf32, #tpu.memory_space<vmem>>, %arg5: memref<2x128xf32, #tpu.memory_space<vmem>>) attributes {dimension_semantics = [#tpu.dimension_semantics<arbitrary>], iteration_bounds = array<i64: 1>, scalar_prefetch = 0 : i64, scratch_operands = 0 : i64, tpu.core_type = #tpu.core_type<tc>, window_params = [{pipeline_mode = #tpu.pipeline_mode<synchronous>, transform_indices = @transform_0, window_bounds = array<i64: 2, 16>}, {pipeline_mode = #tpu.pipeline_mode<synchronous>, transform_indices = @transform_1, window_bounds = array<i64: 16, 128>}, {pipeline_mode = #tpu.pipeline_mode<synchronous>, transform_indices = @transform_2, window_bounds = array<i64: 128, 128>}, {pipeline_mode = #tpu.pipeline_mode<synchronous>, transform_indices = @transform_3, window_bounds = array<i64: 1, 128>}, {pipeline_mode = #tpu.pipeline_mode<synchronous>, transform_indices = @transform_4, window_bounds = array<i64: 2, 128>}]} {
    %c0 = arith.constant 0 : index
    %c0_0 = arith.constant 0 : index
    %0 = vector.load %arg1[%c0, %c0_0] : memref<2x16xf32, #tpu.memory_space<vmem>>, vector<2x16xf32>
    %c0_1 = arith.constant 0 : index
    %c0_2 = arith.constant 0 : index
    %1 = vector.load %arg2[%c0_1, %c0_2] : memref<16x128xf32, #tpu.memory_space<vmem>>, vector<16x128xf32>
    %cst = arith.constant dense<0.000000e+00> : vector<2x128xf32>
    %2 = tpu.matmul %0, %1, %cst {dimension_numbers = #tpu.dot_dimension_numbers<[1], [0], [0], [1], [0, 0, 1, 1], [], []>} : vector<2x16xf32>, vector<16x128xf32>, vector<2x128xf32> -> vector<2x128xf32>
    %c0_3 = arith.constant 0 : index
    %c0_4 = arith.constant 0 : index
    %3 = vector.load %arg3[%c0_3, %c0_4] : memref<128x128xf32, #tpu.memory_space<vmem>>, vector<128x128xf32>
    %cst_5 = arith.constant dense<0.000000e+00> : vector<2x128xf32>
    %4 = tpu.matmul %2, %3, %cst_5 {dimension_numbers = #tpu.dot_dimension_numbers<[1], [0], [0], [1], [0, 0, 1, 1], [], []>} : vector<2x128xf32>, vector<128x128xf32>, vector<2x128xf32> -> vector<2x128xf32>
    %c0_6 = arith.constant 0 : index
    %c0_7 = arith.constant 0 : index
    %5 = vector.load %arg4[%c0_6, %c0_7] : memref<1x128xf32, #tpu.memory_space<vmem>>, vector<1x128xf32>
    %6 = vector.broadcast %5 : vector<1x128xf32> to vector<2x128xf32>
    %7 = arith.addf %4, %6 : vector<2x128xf32>
    %c0_8 = arith.constant 0 : index
    %c0_9 = arith.constant 0 : index
    %8 = vector.load %arg5[%c0_8, %c0_9] : memref<2x128xf32, #tpu.memory_space<vmem>>, vector<2x128xf32>
    tpu.vector_store %arg5[%c0_8, %c0_9], %7 {strides = array<i32>} : memref<2x128xf32, #tpu.memory_space<vmem>>, vector<2x128xf32>,
    return
  }
  func.func @transform_0(%arg0: i32) -> (i32, i32) {
    %c0_i32 = arith.constant 0 : i32
    %c0_i32_0 = arith.constant 0 : i32
    %c0_i32_1 = arith.constant 0 : i32
    return %c0_i32, %c0_i32_0 : i32, i32
  }
  func.func @transform_1(%arg0: i32) -> (i32, i32) {
    %c0_i32 = arith.constant 0 : i32
    %c0_i32_0 = arith.constant 0 : i32
    %c0_i32_1 = arith.constant 0 : i32
    return %c0_i32, %c0_i32_0 : i32, i32
  }
  func.func @transform_2(%arg0: i32) -> (i32, i32) {
    %c0_i32 = arith.constant 0 : i32
    %c0_i32_0 = arith.constant 0 : i32
    %c0_i32_1 = arith.constant 0 : i32
    return %c0_i32, %c0_i32_0 : i32, i32
  }
  func.func @transform_3(%arg0: i32) -> (i32, i32) {
    %c0_i32 = arith.constant 0 : i32
    %c0_i32_0 = arith.constant 0 : i32
    %c0_i32_1 = arith.constant 0 : i32
    return %c0_i32, %c0_i32_0 : i32, i32
  }
  func.func @transform_4(%arg0: i32) -> (i32, i32) {
    %c0_i32 = arith.constant 0 : i32
    %c0_i32_0 = arith.constant 0 : i32
    %c0_i32_1 = arith.constant 0 : i32
    return %c0_i32, %c0_i32_0 : i32, i32
  }
}

module attributes {stable_mosaic.version = 11 : i64} {
  func.func @_gps_layer_kernel(%arg0: i32, %arg1: memref<16x128xf32, #tpu.memory_space<vmem>>, %arg2: memref<16x16xf32, #tpu.memory_space<vmem>>, %arg3: memref<16x16xf32, #tpu.memory_space<vmem>>, %arg4: memref<2x128x128xf32, #tpu.memory_space<vmem>>, %arg5: memref<2x1x128xf32, #tpu.memory_space<vmem>>, %arg6: memref<128x96xf32, #tpu.memory_space<vmem>>, %arg7: memref<1x96xf32, #tpu.memory_space<vmem>>, %arg8: memref<32x128xf32, #tpu.memory_space<vmem>>, %arg9: memref<1x128xf32, #tpu.memory_space<vmem>>, %arg10: memref<2x128x128xf32, #tpu.memory_space<vmem>>, %arg11: memref<2x1x128xf32, #tpu.memory_space<vmem>>, %arg12: memref<3x1x128xf32, #tpu.memory_space<vmem>>, %arg13: memref<3x1x128xf32, #tpu.memory_space<vmem>>, %arg14: memref<16x128xf32, #tpu.memory_space<vmem>>) attributes {dimension_semantics = [#tpu.dimension_semantics<arbitrary>], iteration_bounds = array<i64: 1>, scalar_prefetch = 0 : i64, scratch_operands = 0 : i64, tpu.core_type = #tpu.core_type<tc>, window_params = [{pipeline_mode = #tpu.pipeline_mode<synchronous>, transform_indices = @transform_0, window_bounds = array<i64: 16, 128>}, {pipeline_mode = #tpu.pipeline_mode<synchronous>, transform_indices = @transform_1, window_bounds = array<i64: 16, 16>}, {pipeline_mode = #tpu.pipeline_mode<synchronous>, transform_indices = @transform_2, window_bounds = array<i64: 16, 16>}, {pipeline_mode = #tpu.pipeline_mode<synchronous>, transform_indices = @transform_3, window_bounds = array<i64: 2, 128, 128>}, {pipeline_mode = #tpu.pipeline_mode<synchronous>, transform_indices = @transform_4, window_bounds = array<i64: 2, 1, 128>}, {pipeline_mode = #tpu.pipeline_mode<synchronous>, transform_indices = @transform_5, window_bounds = array<i64: 128, 96>}, {pipeline_mode = #tpu.pipeline_mode<synchronous>, transform_indices = @transform_6, window_bounds = array<i64: 1, 96>}, {pipeline_mode = #tpu.pipeline_mode<synchronous>, transform_indices = @transform_7, window_bounds = array<i64: 32, 128>}, {pipeline_mode = #tpu.pipeline_mode<synchronous>, transform_indices = @transform_8, window_bounds = array<i64: 1, 128>}, {pipeline_mode = #tpu.pipeline_mode<synchronous>, transform_indices = @transform_9, window_bounds = array<i64: 2, 128, 128>}, {pipeline_mode = #tpu.pipeline_mode<synchronous>, transform_indices = @transform_10, window_bounds = array<i64: 2, 1, 128>}, {pipeline_mode = #tpu.pipeline_mode<synchronous>, transform_indices = @transform_11, window_bounds = array<i64: 3, 1, 128>}, {pipeline_mode = #tpu.pipeline_mode<synchronous>, transform_indices = @transform_12, window_bounds = array<i64: 3, 1, 128>}, {pipeline_mode = #tpu.pipeline_mode<synchronous>, transform_indices = @transform_13, window_bounds = array<i64: 16, 128>}]} {
    %c0 = arith.constant 0 : index
    %c0_0 = arith.constant 0 : index
    %0 = vector.load %arg1[%c0, %c0_0] : memref<16x128xf32, #tpu.memory_space<vmem>>, vector<16x128xf32>
    %c0_1 = arith.constant 0 : index
    %c0_2 = arith.constant 0 : index
    %1 = vector.load %arg2[%c0_1, %c0_2] : memref<16x16xf32, #tpu.memory_space<vmem>>, vector<16x16xf32>
    %cst = arith.constant dense<0.000000e+00> : vector<16x128xf32>
    %2 = tpu.matmul %1, %0, %cst {dimension_numbers = #tpu.dot_dimension_numbers<[1], [0], [0], [1], [0, 0, 1, 1], [], []>} : vector<16x16xf32>, vector<16x128xf32>, vector<16x128xf32> -> vector<16x128xf32>
    %3 = arith.addf %0, %2 : vector<16x128xf32>
    %c0_3 = arith.constant 0 : index
    %c0_4 = arith.constant 0 : index
    %c0_5 = arith.constant 0 : index
    %4 = vector.load %arg4[%c0_3, %c0_4, %c0_5] : memref<2x128x128xf32, #tpu.memory_space<vmem>>, vector<1x128x128xf32>
    %5 = vector.shape_cast %4 : vector<1x128x128xf32> to vector<128x128xf32>
    %cst_6 = arith.constant dense<0.000000e+00> : vector<16x128xf32>
    %6 = tpu.matmul %3, %5, %cst_6 {dimension_numbers = #tpu.dot_dimension_numbers<[1], [0], [0], [1], [0, 0, 1, 1], [], []>} : vector<16x128xf32>, vector<128x128xf32>, vector<16x128xf32> -> vector<16x128xf32>
    %c0_7 = arith.constant 0 : index
    %c0_8 = arith.constant 0 : index
    %c0_9 = arith.constant 0 : index
    %7 = vector.load %arg5[%c0_7, %c0_8, %c0_9] : memref<2x1x128xf32, #tpu.memory_space<vmem>>, vector<1x1x128xf32>
    %8 = vector.shape_cast %7 : vector<1x1x128xf32> to vector<1x128xf32>
    %9 = vector.broadcast %8 : vector<1x128xf32> to vector<16x128xf32>
    %10 = arith.addf %6, %9 : vector<16x128xf32>
    %cst_10 = arith.constant 0.000000e+00 : f32
    %11 = vector.broadcast %cst_10 : f32 to vector<16x128xf32>
    %12 = arith.maximumf %10, %11 : vector<16x128xf32>
    %c1 = arith.constant 1 : index
    %c0_11 = arith.constant 0 : index
    %c0_12 = arith.constant 0 : index
    %13 = vector.load %arg4[%c1, %c0_11, %c0_12] : memref<2x128x128xf32, #tpu.memory_space<vmem>>, vector<1x128x128xf32>
    %14 = vector.shape_cast %13 : vector<1x128x128xf32> to vector<128x128xf32>
    %cst_13 = arith.constant dense<0.000000e+00> : vector<16x128xf32>
    %15 = tpu.matmul %12, %14, %cst_13 {dimension_numbers = #tpu.dot_dimension_numbers<[1], [0], [0], [1], [0, 0, 1, 1], [], []>} : vector<16x128xf32>, vector<128x128xf32>, vector<16x128xf32> -> vector<16x128xf32>
    %c1_14 = arith.constant 1 : index
    %c0_15 = arith.constant 0 : index
    %c0_16 = arith.constant 0 : index
    %16 = vector.load %arg5[%c1_14, %c0_15, %c0_16] : memref<2x1x128xf32, #tpu.memory_space<vmem>>, vector<1x1x128xf32>
    %17 = vector.shape_cast %16 : vector<1x1x128xf32> to vector<1x128xf32>
    %18 = vector.broadcast %17 : vector<1x128xf32> to vector<16x128xf32>
    %19 = arith.addf %15, %18 : vector<16x128xf32>
    %20 = arith.addf %19, %0 : vector<16x128xf32>
    %c0_17 = arith.constant 0 : index
    %c0_18 = arith.constant 0 : index
    %c0_19 = arith.constant 0 : index
    %21 = vector.load %arg12[%c0_17, %c0_18, %c0_19] : memref<3x1x128xf32, #tpu.memory_space<vmem>>, vector<1x1x128xf32>
    %22 = vector.shape_cast %21 : vector<1x1x128xf32> to vector<1x128xf32>
    %c0_20 = arith.constant 0 : index
    %c0_21 = arith.constant 0 : index
    %c0_22 = arith.constant 0 : index
    %23 = vector.load %arg13[%c0_20, %c0_21, %c0_22] : memref<3x1x128xf32, #tpu.memory_space<vmem>>, vector<1x1x128xf32>
    %24 = vector.shape_cast %23 : vector<1x1x128xf32> to vector<1x128xf32>
    %cst_23 = arith.constant dense<0.000000e+00> : vector<128xf32>
    %25 = vector.multi_reduction <add>, %20, %cst_23 [0] : vector<16x128xf32> to vector<128xf32>
    %26 = vector.shape_cast %25 : vector<128xf32> to vector<1x128xf32>
    %cst_24 = arith.constant 6.250000e-02 : f32
    %27 = vector.broadcast %cst_24 : f32 to vector<1x128xf32>
    %28 = arith.mulf %26, %27 : vector<1x128xf32>
    %29 = vector.broadcast %28 : vector<1x128xf32> to vector<16x128xf32>
    %30 = arith.subf %20, %29 : vector<16x128xf32>
    %31 = arith.mulf %30, %30 : vector<16x128xf32>
    %cst_25 = arith.constant dense<0.000000e+00> : vector<128xf32>
    %32 = vector.multi_reduction <add>, %31, %cst_25 [0] : vector<16x128xf32> to vector<128xf32>
    %33 = vector.shape_cast %32 : vector<128xf32> to vector<1x128xf32>
    %cst_26 = arith.constant 6.250000e-02 : f32
    %34 = vector.broadcast %cst_26 : f32 to vector<1x128xf32>
    %35 = arith.mulf %33, %34 : vector<1x128xf32>
    %36 = vector.broadcast %28 : vector<1x128xf32> to vector<16x128xf32>
    %37 = arith.subf %20, %36 : vector<16x128xf32>
    %cst_27 = arith.constant 9.99999974E-6 : f32
    %38 = vector.broadcast %cst_27 : f32 to vector<1x128xf32>
    %39 = arith.addf %35, %38 : vector<1x128xf32>
    %40 = math.rsqrt %39 : vector<1x128xf32>
    %41 = vector.broadcast %40 : vector<1x128xf32> to vector<16x128xf32>
    %42 = arith.mulf %37, %41 : vector<16x128xf32>
    %43 = vector.broadcast %22 : vector<1x128xf32> to vector<16x128xf32>
    %44 = arith.mulf %42, %43 : vector<16x128xf32>
    %45 = vector.broadcast %24 : vector<1x128xf32> to vector<16x128xf32>
    %46 = arith.addf %44, %45 : vector<16x128xf32>
    %c0_28 = arith.constant 0 : index
    %c0_29 = arith.constant 0 : index
    %47 = vector.load %arg6[%c0_28, %c0_29] : memref<128x96xf32, #tpu.memory_space<vmem>>, vector<128x96xf32>
    %cst_30 = arith.constant dense<0.000000e+00> : vector<16x96xf32>
    %48 = tpu.matmul %0, %47, %cst_30 {dimension_numbers = #tpu.dot_dimension_numbers<[1], [0], [0], [1], [0, 0, 1, 1], [], []>} : vector<16x128xf32>, vector<128x96xf32>, vector<16x96xf32> -> vector<16x96xf32>
    %c0_31 = arith.constant 0 : index
    %c0_32 = arith.constant 0 : index
    %49 = vector.load %arg7[%c0_31, %c0_32] : memref<1x96xf32, #tpu.memory_space<vmem>>, vector<1x96xf32>
    %50 = vector.broadcast %49 : vector<1x96xf32> to vector<16x96xf32>
    %51 = arith.addf %48, %50 : vector<16x96xf32>
    %52 = vector.extract_strided_slice %51 {offsets = [0, 0], sizes = [16, 32], strides = [1, 1]} : vector<16x96xf32> to vector<16x32xf32>
    %53 = vector.extract_strided_slice %51 {offsets = [0, 32], sizes = [16, 32], strides = [1, 1]} : vector<16x96xf32> to vector<16x32xf32>
    %54 = vector.extract_strided_slice %51 {offsets = [0, 64], sizes = [16, 32], strides = [1, 1]} : vector<16x96xf32> to vector<16x32xf32>
    %c0_33 = arith.constant 0 : index
    %c0_34 = arith.constant 0 : index
    %55 = vector.load %arg3[%c0_33, %c0_34] : memref<16x16xf32, #tpu.memory_space<vmem>>, vector<16x16xf32>
    %56 = vector.extract_strided_slice %52 {offsets = [0, 0], sizes = [16, 8], strides = [1, 1]} : vector<16x32xf32> to vector<16x8xf32>
    %cst_35 = arith.constant 0.353553385 : f32
    %57 = vector.broadcast %cst_35 : f32 to vector<16x8xf32>
    %58 = arith.mulf %56, %57 : vector<16x8xf32>
    %59 = vector.extract_strided_slice %53 {offsets = [0, 0], sizes = [16, 8], strides = [1, 1]} : vector<16x32xf32> to vector<16x8xf32>
    %60 = vector.extract_strided_slice %54 {offsets = [0, 0], sizes = [16, 8], strides = [1, 1]} : vector<16x32xf32> to vector<16x8xf32>
    %cst_36 = arith.constant dense<0.000000e+00> : vector<16x16xf32>
    %61 = tpu.matmul %58, %59, %cst_36 {dimension_numbers = #tpu.dot_dimension_numbers<[1], [1], [0], [0], [0, 0, 1, 0], [], []>} : vector<16x8xf32>, vector<16x8xf32>, vector<16x16xf32> -> vector<16x16xf32>
    %62 = arith.addf %61, %55 : vector<16x16xf32>
    %cst_37 = arith.constant dense<0xFF800000> : vector<16xf32>
    %63 = vector.multi_reduction <maximumf>, %62, %cst_37 [1] : vector<16x16xf32> to vector<16xf32>
    %64 = vector.shape_cast %63 : vector<16xf32> to vector<16x1xf32>
    %65 = vector.broadcast %64 : vector<16x1xf32> to vector<16x16xf32>
    %66 = arith.subf %62, %65 : vector<16x16xf32>
    %67 = math.exp %66 : vector<16x16xf32>
    %cst_38 = arith.constant dense<0.000000e+00> : vector<16xf32>
    %68 = vector.multi_reduction <add>, %67, %cst_38 [1] : vector<16x16xf32> to vector<16xf32>
    %69 = vector.shape_cast %68 : vector<16xf32> to vector<16x1xf32>
    %70 = tpu.reciprocal %69 {approx = true} : vector<16x1xf32> -> vector<16x1xf32>
    %71 = vector.broadcast %70 : vector<16x1xf32> to vector<16x16xf32>
    %72 = arith.mulf %67, %71 : vector<16x16xf32>
    %cst_39 = arith.constant dense<0.000000e+00> : vector<16x8xf32>
    %73 = tpu.matmul %72, %60, %cst_39 {dimension_numbers = #tpu.dot_dimension_numbers<[1], [0], [0], [1], [0, 0, 1, 1], [], []>} : vector<16x16xf32>, vector<16x8xf32>, vector<16x8xf32> -> vector<16x8xf32>
    %74 = vector.extract_strided_slice %52 {offsets = [0, 8], sizes = [16, 8], strides = [1, 1]} : vector<16x32xf32> to vector<16x8xf32>
    %cst_40 = arith.constant 0.353553385 : f32
    %75 = vector.broadcast %cst_40 : f32 to vector<16x8xf32>
    %76 = arith.mulf %74, %75 : vector<16x8xf32>
    %77 = vector.extract_strided_slice %53 {offsets = [0, 8], sizes = [16, 8], strides = [1, 1]} : vector<16x32xf32> to vector<16x8xf32>
    %78 = vector.extract_strided_slice %54 {offsets = [0, 8], sizes = [16, 8], strides = [1, 1]} : vector<16x32xf32> to vector<16x8xf32>
    %cst_41 = arith.constant dense<0.000000e+00> : vector<16x16xf32>
    %79 = tpu.matmul %76, %77, %cst_41 {dimension_numbers = #tpu.dot_dimension_numbers<[1], [1], [0], [0], [0, 0, 1, 0], [], []>} : vector<16x8xf32>, vector<16x8xf32>, vector<16x16xf32> -> vector<16x16xf32>
    %80 = arith.addf %79, %55 : vector<16x16xf32>
    %cst_42 = arith.constant dense<0xFF800000> : vector<16xf32>
    %81 = vector.multi_reduction <maximumf>, %80, %cst_42 [1] : vector<16x16xf32> to vector<16xf32>
    %82 = vector.shape_cast %81 : vector<16xf32> to vector<16x1xf32>
    %83 = vector.broadcast %82 : vector<16x1xf32> to vector<16x16xf32>
    %84 = arith.subf %80, %83 : vector<16x16xf32>
    %85 = math.exp %84 : vector<16x16xf32>
    %cst_43 = arith.constant dense<0.000000e+00> : vector<16xf32>
    %86 = vector.multi_reduction <add>, %85, %cst_43 [1] : vector<16x16xf32> to vector<16xf32>
    %87 = vector.shape_cast %86 : vector<16xf32> to vector<16x1xf32>
    %88 = tpu.reciprocal %87 {approx = true} : vector<16x1xf32> -> vector<16x1xf32>
    %89 = vector.broadcast %88 : vector<16x1xf32> to vector<16x16xf32>
    %90 = arith.mulf %85, %89 : vector<16x16xf32>
    %cst_44 = arith.constant dense<0.000000e+00> : vector<16x8xf32>
    %91 = tpu.matmul %90, %78, %cst_44 {dimension_numbers = #tpu.dot_dimension_numbers<[1], [0], [0], [1], [0, 0, 1, 1], [], []>} : vector<16x16xf32>, vector<16x8xf32>, vector<16x8xf32> -> vector<16x8xf32>
    %92 = vector.extract_strided_slice %52 {offsets = [0, 16], sizes = [16, 8], strides = [1, 1]} : vector<16x32xf32> to vector<16x8xf32>
    %cst_45 = arith.constant 0.353553385 : f32
    %93 = vector.broadcast %cst_45 : f32 to vector<16x8xf32>
    %94 = arith.mulf %92, %93 : vector<16x8xf32>
    %95 = vector.extract_strided_slice %53 {offsets = [0, 16], sizes = [16, 8], strides = [1, 1]} : vector<16x32xf32> to vector<16x8xf32>
    %96 = vector.extract_strided_slice %54 {offsets = [0, 16], sizes = [16, 8], strides = [1, 1]} : vector<16x32xf32> to vector<16x8xf32>
    %cst_46 = arith.constant dense<0.000000e+00> : vector<16x16xf32>
    %97 = tpu.matmul %94, %95, %cst_46 {dimension_numbers = #tpu.dot_dimension_numbers<[1], [1], [0], [0], [0, 0, 1, 0], [], []>} : vector<16x8xf32>, vector<16x8xf32>, vector<16x16xf32> -> vector<16x16xf32>
    %98 = arith.addf %97, %55 : vector<16x16xf32>
    %cst_47 = arith.constant dense<0xFF800000> : vector<16xf32>
    %99 = vector.multi_reduction <maximumf>, %98, %cst_47 [1] : vector<16x16xf32> to vector<16xf32>
    %100 = vector.shape_cast %99 : vector<16xf32> to vector<16x1xf32>
    %101 = vector.broadcast %100 : vector<16x1xf32> to vector<16x16xf32>
    %102 = arith.subf %98, %101 : vector<16x16xf32>
    %103 = math.exp %102 : vector<16x16xf32>
    %cst_48 = arith.constant dense<0.000000e+00> : vector<16xf32>
    %104 = vector.multi_reduction <add>, %103, %cst_48 [1] : vector<16x16xf32> to vector<16xf32>
    %105 = vector.shape_cast %104 : vector<16xf32> to vector<16x1xf32>
    %106 = tpu.reciprocal %105 {approx = true} : vector<16x1xf32> -> vector<16x1xf32>
    %107 = vector.broadcast %106 : vector<16x1xf32> to vector<16x16xf32>
    %108 = arith.mulf %103, %107 : vector<16x16xf32>
    %cst_49 = arith.constant dense<0.000000e+00> : vector<16x8xf32>
    %109 = tpu.matmul %108, %96, %cst_49 {dimension_numbers = #tpu.dot_dimension_numbers<[1], [0], [0], [1], [0, 0, 1, 1], [], []>} : vector<16x16xf32>, vector<16x8xf32>, vector<16x8xf32> -> vector<16x8xf32>
    %110 = vector.extract_strided_slice %52 {offsets = [0, 24], sizes = [16, 8], strides = [1, 1]} : vector<16x32xf32> to vector<16x8xf32>
    %cst_50 = arith.constant 0.353553385 : f32
    %111 = vector.broadcast %cst_50 : f32 to vector<16x8xf32>
    %112 = arith.mulf %110, %111 : vector<16x8xf32>
    %113 = vector.extract_strided_slice %53 {offsets = [0, 24], sizes = [16, 8], strides = [1, 1]} : vector<16x32xf32> to vector<16x8xf32>
    %114 = vector.extract_strided_slice %54 {offsets = [0, 24], sizes = [16, 8], strides = [1, 1]} : vector<16x32xf32> to vector<16x8xf32>
    %cst_51 = arith.constant dense<0.000000e+00> : vector<16x16xf32>
    %115 = tpu.matmul %112, %113, %cst_51 {dimension_numbers = #tpu.dot_dimension_numbers<[1], [1], [0], [0], [0, 0, 1, 0], [], []>} : vector<16x8xf32>, vector<16x8xf32>, vector<16x16xf32> -> vector<16x16xf32>
    %116 = arith.addf %115, %55 : vector<16x16xf32>
    %cst_52 = arith.constant dense<0xFF800000> : vector<16xf32>
    %117 = vector.multi_reduction <maximumf>, %116, %cst_52 [1] : vector<16x16xf32> to vector<16xf32>
    %118 = vector.shape_cast %117 : vector<16xf32> to vector<16x1xf32>
    %119 = vector.broadcast %118 : vector<16x1xf32> to vector<16x16xf32>
    %120 = arith.subf %116, %119 : vector<16x16xf32>
    %121 = math.exp %120 : vector<16x16xf32>
    %cst_53 = arith.constant dense<0.000000e+00> : vector<16xf32>
    %122 = vector.multi_reduction <add>, %121, %cst_53 [1] : vector<16x16xf32> to vector<16xf32>
    %123 = vector.shape_cast %122 : vector<16xf32> to vector<16x1xf32>
    %124 = tpu.reciprocal %123 {approx = true} : vector<16x1xf32> -> vector<16x1xf32>
    %125 = vector.broadcast %124 : vector<16x1xf32> to vector<16x16xf32>
    %126 = arith.mulf %121, %125 : vector<16x16xf32>
    %cst_54 = arith.constant dense<0.000000e+00> : vector<16x8xf32>
    %127 = tpu.matmul %126, %114, %cst_54 {dimension_numbers = #tpu.dot_dimension_numbers<[1], [0], [0], [1], [0, 0, 1, 1], [], []>} : vector<16x16xf32>, vector<16x8xf32>, vector<16x8xf32> -> vector<16x8xf32>
    %128 = tpu.concatenate %73, %91, %109, %127 in 1 : vector<16x8xf32>, vector<16x8xf32>, vector<16x8xf32>, vector<16x8xf32> -> vector<16x32xf32>
    %c0_55 = arith.constant 0 : index
    %c0_56 = arith.constant 0 : index
    %129 = vector.load %arg8[%c0_55, %c0_56] : memref<32x128xf32, #tpu.memory_space<vmem>>, vector<32x128xf32>
    %cst_57 = arith.constant dense<0.000000e+00> : vector<16x128xf32>
    %130 = tpu.matmul %128, %129, %cst_57 {dimension_numbers = #tpu.dot_dimension_numbers<[1], [0], [0], [1], [0, 0, 1, 1], [], []>} : vector<16x32xf32>, vector<32x128xf32>, vector<16x128xf32> -> vector<16x128xf32>
    %c0_58 = arith.constant 0 : index
    %c0_59 = arith.constant 0 : index
    %131 = vector.load %arg9[%c0_58, %c0_59] : memref<1x128xf32, #tpu.memory_space<vmem>>, vector<1x128xf32>
    %132 = vector.broadcast %131 : vector<1x128xf32> to vector<16x128xf32>
    %133 = arith.addf %130, %132 : vector<16x128xf32>
    %134 = arith.addf %133, %0 : vector<16x128xf32>
    %c1_60 = arith.constant 1 : index
    %c0_61 = arith.constant 0 : index
    %c0_62 = arith.constant 0 : index
    %135 = vector.load %arg12[%c1_60, %c0_61, %c0_62] : memref<3x1x128xf32, #tpu.memory_space<vmem>>, vector<1x1x128xf32>
    %136 = vector.shape_cast %135 : vector<1x1x128xf32> to vector<1x128xf32>
    %c1_63 = arith.constant 1 : index
    %c0_64 = arith.constant 0 : index
    %c0_65 = arith.constant 0 : index
    %137 = vector.load %arg13[%c1_63, %c0_64, %c0_65] : memref<3x1x128xf32, #tpu.memory_space<vmem>>, vector<1x1x128xf32>
    %138 = vector.shape_cast %137 : vector<1x1x128xf32> to vector<1x128xf32>
    %cst_66 = arith.constant dense<0.000000e+00> : vector<128xf32>
    %139 = vector.multi_reduction <add>, %134, %cst_66 [0] : vector<16x128xf32> to vector<128xf32>
    %140 = vector.shape_cast %139 : vector<128xf32> to vector<1x128xf32>
    %cst_67 = arith.constant 6.250000e-02 : f32
    %141 = vector.broadcast %cst_67 : f32 to vector<1x128xf32>
    %142 = arith.mulf %140, %141 : vector<1x128xf32>
    %143 = vector.broadcast %142 : vector<1x128xf32> to vector<16x128xf32>
    %144 = arith.subf %134, %143 : vector<16x128xf32>
    %145 = arith.mulf %144, %144 : vector<16x128xf32>
    %cst_68 = arith.constant dense<0.000000e+00> : vector<128xf32>
    %146 = vector.multi_reduction <add>, %145, %cst_68 [0] : vector<16x128xf32> to vector<128xf32>
    %147 = vector.shape_cast %146 : vector<128xf32> to vector<1x128xf32>
    %cst_69 = arith.constant 6.250000e-02 : f32
    %148 = vector.broadcast %cst_69 : f32 to vector<1x128xf32>
    %149 = arith.mulf %147, %148 : vector<1x128xf32>
    %150 = vector.broadcast %142 : vector<1x128xf32> to vector<16x128xf32>
    %151 = arith.subf %134, %150 : vector<16x128xf32>
    %cst_70 = arith.constant 9.99999974E-6 : f32
    %152 = vector.broadcast %cst_70 : f32 to vector<1x128xf32>
    %153 = arith.addf %149, %152 : vector<1x128xf32>
    %154 = math.rsqrt %153 : vector<1x128xf32>
    %155 = vector.broadcast %154 : vector<1x128xf32> to vector<16x128xf32>
    %156 = arith.mulf %151, %155 : vector<16x128xf32>
    %157 = vector.broadcast %136 : vector<1x128xf32> to vector<16x128xf32>
    %158 = arith.mulf %156, %157 : vector<16x128xf32>
    %159 = vector.broadcast %138 : vector<1x128xf32> to vector<16x128xf32>
    %160 = arith.addf %158, %159 : vector<16x128xf32>
    %161 = arith.addf %46, %160 : vector<16x128xf32>
    %c0_71 = arith.constant 0 : index
    %c0_72 = arith.constant 0 : index
    %c0_73 = arith.constant 0 : index
    %162 = vector.load %arg10[%c0_71, %c0_72, %c0_73] : memref<2x128x128xf32, #tpu.memory_space<vmem>>, vector<1x128x128xf32>
    %163 = vector.shape_cast %162 : vector<1x128x128xf32> to vector<128x128xf32>
    %cst_74 = arith.constant dense<0.000000e+00> : vector<16x128xf32>
    %164 = tpu.matmul %161, %163, %cst_74 {dimension_numbers = #tpu.dot_dimension_numbers<[1], [0], [0], [1], [0, 0, 1, 1], [], []>} : vector<16x128xf32>, vector<128x128xf32>, vector<16x128xf32> -> vector<16x128xf32>
    %c0_75 = arith.constant 0 : index
    %c0_76 = arith.constant 0 : index
    %c0_77 = arith.constant 0 : index
    %165 = vector.load %arg11[%c0_75, %c0_76, %c0_77] : memref<2x1x128xf32, #tpu.memory_space<vmem>>, vector<1x1x128xf32>
    %166 = vector.shape_cast %165 : vector<1x1x128xf32> to vector<1x128xf32>
    %167 = vector.broadcast %166 : vector<1x128xf32> to vector<16x128xf32>
    %168 = arith.addf %164, %167 : vector<16x128xf32>
    %cst_78 = arith.constant 0.000000e+00 : f32
    %169 = vector.broadcast %cst_78 : f32 to vector<16x128xf32>
    %170 = arith.maximumf %168, %169 : vector<16x128xf32>
    %c1_79 = arith.constant 1 : index
    %c0_80 = arith.constant 0 : index
    %c0_81 = arith.constant 0 : index
    %171 = vector.load %arg10[%c1_79, %c0_80, %c0_81] : memref<2x128x128xf32, #tpu.memory_space<vmem>>, vector<1x128x128xf32>
    %172 = vector.shape_cast %171 : vector<1x128x128xf32> to vector<128x128xf32>
    %cst_82 = arith.constant dense<0.000000e+00> : vector<16x128xf32>
    %173 = tpu.matmul %170, %172, %cst_82 {dimension_numbers = #tpu.dot_dimension_numbers<[1], [0], [0], [1], [0, 0, 1, 1], [], []>} : vector<16x128xf32>, vector<128x128xf32>, vector<16x128xf32> -> vector<16x128xf32>
    %c1_83 = arith.constant 1 : index
    %c0_84 = arith.constant 0 : index
    %c0_85 = arith.constant 0 : index
    %174 = vector.load %arg11[%c1_83, %c0_84, %c0_85] : memref<2x1x128xf32, #tpu.memory_space<vmem>>, vector<1x1x128xf32>
    %175 = vector.shape_cast %174 : vector<1x1x128xf32> to vector<1x128xf32>
    %176 = vector.broadcast %175 : vector<1x128xf32> to vector<16x128xf32>
    %177 = arith.addf %173, %176 : vector<16x128xf32>
    %178 = arith.addf %161, %177 : vector<16x128xf32>
    %c2 = arith.constant 2 : index
    %c0_86 = arith.constant 0 : index
    %c0_87 = arith.constant 0 : index
    %179 = vector.load %arg12[%c2, %c0_86, %c0_87] : memref<3x1x128xf32, #tpu.memory_space<vmem>>, vector<1x1x128xf32>
    %180 = vector.shape_cast %179 : vector<1x1x128xf32> to vector<1x128xf32>
    %c2_88 = arith.constant 2 : index
    %c0_89 = arith.constant 0 : index
    %c0_90 = arith.constant 0 : index
    %181 = vector.load %arg13[%c2_88, %c0_89, %c0_90] : memref<3x1x128xf32, #tpu.memory_space<vmem>>, vector<1x1x128xf32>
    %182 = vector.shape_cast %181 : vector<1x1x128xf32> to vector<1x128xf32>
    %cst_91 = arith.constant dense<0.000000e+00> : vector<128xf32>
    %183 = vector.multi_reduction <add>, %178, %cst_91 [0] : vector<16x128xf32> to vector<128xf32>
    %184 = vector.shape_cast %183 : vector<128xf32> to vector<1x128xf32>
    %cst_92 = arith.constant 6.250000e-02 : f32
    %185 = vector.broadcast %cst_92 : f32 to vector<1x128xf32>
    %186 = arith.mulf %184, %185 : vector<1x128xf32>
    %187 = vector.broadcast %186 : vector<1x128xf32> to vector<16x128xf32>
    %188 = arith.subf %178, %187 : vector<16x128xf32>
    %189 = arith.mulf %188, %188 : vector<16x128xf32>
    %cst_93 = arith.constant dense<0.000000e+00> : vector<128xf32>
    %190 = vector.multi_reduction <add>, %189, %cst_93 [0] : vector<16x128xf32> to vector<128xf32>
    %191 = vector.shape_cast %190 : vector<128xf32> to vector<1x128xf32>
    %cst_94 = arith.constant 6.250000e-02 : f32
    %192 = vector.broadcast %cst_94 : f32 to vector<1x128xf32>
    %193 = arith.mulf %191, %192 : vector<1x128xf32>
    %194 = vector.broadcast %186 : vector<1x128xf32> to vector<16x128xf32>
    %195 = arith.subf %178, %194 : vector<16x128xf32>
    %cst_95 = arith.constant 9.99999974E-6 : f32
    %196 = vector.broadcast %cst_95 : f32 to vector<1x128xf32>
    %197 = arith.addf %193, %196 : vector<1x128xf32>
    %198 = math.rsqrt %197 : vector<1x128xf32>
    %199 = vector.broadcast %198 : vector<1x128xf32> to vector<16x128xf32>
    %200 = arith.mulf %195, %199 : vector<16x128xf32>
    %201 = vector.broadcast %180 : vector<1x128xf32> to vector<16x128xf32>
    %202 = arith.mulf %200, %201 : vector<16x128xf32>
    %203 = vector.broadcast %182 : vector<1x128xf32> to vector<16x128xf32>
    %204 = arith.addf %202, %203 : vector<16x128xf32>
    %c0_96 = arith.constant 0 : index
    %c0_97 = arith.constant 0 : index
    %205 = vector.load %arg14[%c0_96, %c0_97] : memref<16x128xf32, #tpu.memory_space<vmem>>, vector<16x128xf32>
    tpu.vector_store %arg14[%c0_96, %c0_97], %204 {strides = array<i32>} : memref<16x128xf32, #tpu.memory_space<vmem>>, vector<16x128xf32>,
    return
  }
  func.func @transform_0(%arg0: i32) -> (i32, i32) {
    %c0_i32 = arith.constant 0 : i32
    %c0_i32_0 = arith.constant 0 : i32
    %c0_i32_1 = arith.constant 0 : i32
    return %c0_i32, %c0_i32_0 : i32, i32
  }
  func.func @transform_1(%arg0: i32) -> (i32, i32) {
    %c0_i32 = arith.constant 0 : i32
    %c0_i32_0 = arith.constant 0 : i32
    %c0_i32_1 = arith.constant 0 : i32
    return %c0_i32, %c0_i32_0 : i32, i32
  }
  func.func @transform_2(%arg0: i32) -> (i32, i32) {
    %c0_i32 = arith.constant 0 : i32
    %c0_i32_0 = arith.constant 0 : i32
    %c0_i32_1 = arith.constant 0 : i32
    return %c0_i32, %c0_i32_0 : i32, i32
  }
  func.func @transform_3(%arg0: i32) -> (i32, i32, i32) {
    %c0_i32 = arith.constant 0 : i32
    %c0_i32_0 = arith.constant 0 : i32
    %c0_i32_1 = arith.constant 0 : i32
    %c0_i32_2 = arith.constant 0 : i32
    return %c0_i32, %c0_i32_0, %c0_i32_1 : i32, i32, i32
  }
  func.func @transform_4(%arg0: i32) -> (i32, i32, i32) {
    %c0_i32 = arith.constant 0 : i32
    %c0_i32_0 = arith.constant 0 : i32
    %c0_i32_1 = arith.constant 0 : i32
    %c0_i32_2 = arith.constant 0 : i32
    return %c0_i32, %c0_i32_0, %c0_i32_1 : i32, i32, i32
  }
  func.func @transform_5(%arg0: i32) -> (i32, i32) {
    %c0_i32 = arith.constant 0 : i32
    %c0_i32_0 = arith.constant 0 : i32
    %c0_i32_1 = arith.constant 0 : i32
    return %c0_i32, %c0_i32_0 : i32, i32
  }
  func.func @transform_6(%arg0: i32) -> (i32, i32) {
    %c0_i32 = arith.constant 0 : i32
    %c0_i32_0 = arith.constant 0 : i32
    %c0_i32_1 = arith.constant 0 : i32
    return %c0_i32, %c0_i32_0 : i32, i32
  }
  func.func @transform_7(%arg0: i32) -> (i32, i32) {
    %c0_i32 = arith.constant 0 : i32
    %c0_i32_0 = arith.constant 0 : i32
    %c0_i32_1 = arith.constant 0 : i32
    return %c0_i32, %c0_i32_0 : i32, i32
  }
  func.func @transform_8(%arg0: i32) -> (i32, i32) {
    %c0_i32 = arith.constant 0 : i32
    %c0_i32_0 = arith.constant 0 : i32
    %c0_i32_1 = arith.constant 0 : i32
    return %c0_i32, %c0_i32_0 : i32, i32
  }
  func.func @transform_9(%arg0: i32) -> (i32, i32, i32) {
    %c0_i32 = arith.constant 0 : i32
    %c0_i32_0 = arith.constant 0 : i32
    %c0_i32_1 = arith.constant 0 : i32
    %c0_i32_2 = arith.constant 0 : i32
    return %c0_i32, %c0_i32_0, %c0_i32_1 : i32, i32, i32
  }
  func.func @transform_10(%arg0: i32) -> (i32, i32, i32) {
    %c0_i32 = arith.constant 0 : i32
    %c0_i32_0 = arith.constant 0 : i32
    %c0_i32_1 = arith.constant 0 : i32
    %c0_i32_2 = arith.constant 0 : i32
    return %c0_i32, %c0_i32_0, %c0_i32_1 : i32, i32, i32
  }
  func.func @transform_11(%arg0: i32) -> (i32, i32, i32) {
    %c0_i32 = arith.constant 0 : i32
    %c0_i32_0 = arith.constant 0 : i32
    %c0_i32_1 = arith.constant 0 : i32
    %c0_i32_2 = arith.constant 0 : i32
    return %c0_i32, %c0_i32_0, %c0_i32_1 : i32, i32, i32
  }
  func.func @transform_12(%arg0: i32) -> (i32, i32, i32) {
    %c0_i32 = arith.constant 0 : i32
    %c0_i32_0 = arith.constant 0 : i32
    %c0_i32_1 = arith.constant 0 : i32
    %c0_i32_2 = arith.constant 0 : i32
    return %c0_i32, %c0_i32_0, %c0_i32_1 : i32, i32, i32
  }
  func.func @transform_13(%arg0: i32) -> (i32, i32) {
    %c0_i32 = arith.constant 0 : i32
    %c0_i32_0 = arith.constant 0 : i32
    %c0_i32_1 = arith.constant 0 : i32
    return %c0_i32, %c0_i32_0 : i32, i32
  }
}

module attributes {stable_mosaic.version = 11 : i64} {
  func.func @_featurizer_kernel(%arg0: i32, %arg1: memref<2x16x128xf32, #tpu.memory_space<vmem>>, %arg2: memref<2x1x128xf32, #tpu.memory_space<vmem>>, %arg3: memref<2x1x128xf32, #tpu.memory_space<vmem>>, %arg4: memref<2x128x128xf32, #tpu.memory_space<vmem>>, %arg5: memref<2x1x128xf32, #tpu.memory_space<vmem>>, %arg6: memref<2x128x128xf32, #tpu.memory_space<vmem>>, %arg7: memref<2x1x128xf32, #tpu.memory_space<vmem>>, %arg8: memref<2x1x128xf32, #tpu.memory_space<vmem>>, %arg9: memref<2x1x128xf32, #tpu.memory_space<vmem>>, %arg10: memref<16x128xf32, #tpu.memory_space<vmem>>) attributes {dimension_semantics = [#tpu.dimension_semantics<arbitrary>], iteration_bounds = array<i64: 1>, scalar_prefetch = 0 : i64, scratch_operands = 0 : i64, tpu.core_type = #tpu.core_type<tc>, window_params = [{pipeline_mode = #tpu.pipeline_mode<synchronous>, transform_indices = @transform_0, window_bounds = array<i64: 2, 16, 128>}, {pipeline_mode = #tpu.pipeline_mode<synchronous>, transform_indices = @transform_1, window_bounds = array<i64: 2, 1, 128>}, {pipeline_mode = #tpu.pipeline_mode<synchronous>, transform_indices = @transform_2, window_bounds = array<i64: 2, 1, 128>}, {pipeline_mode = #tpu.pipeline_mode<synchronous>, transform_indices = @transform_3, window_bounds = array<i64: 2, 128, 128>}, {pipeline_mode = #tpu.pipeline_mode<synchronous>, transform_indices = @transform_4, window_bounds = array<i64: 2, 1, 128>}, {pipeline_mode = #tpu.pipeline_mode<synchronous>, transform_indices = @transform_5, window_bounds = array<i64: 2, 128, 128>}, {pipeline_mode = #tpu.pipeline_mode<synchronous>, transform_indices = @transform_6, window_bounds = array<i64: 2, 1, 128>}, {pipeline_mode = #tpu.pipeline_mode<synchronous>, transform_indices = @transform_7, window_bounds = array<i64: 2, 1, 128>}, {pipeline_mode = #tpu.pipeline_mode<synchronous>, transform_indices = @transform_8, window_bounds = array<i64: 2, 1, 128>}, {pipeline_mode = #tpu.pipeline_mode<synchronous>, transform_indices = @transform_9, window_bounds = array<i64: 16, 128>}]} {
    %cst = arith.constant 0.000000e+00 : f32
    %0 = vector.broadcast %cst : f32 to vector<16x128xf32>
    %c0 = arith.constant 0 : index
    %c0_0 = arith.constant 0 : index
    %c0_1 = arith.constant 0 : index
    %1 = vector.load %arg1[%c0, %c0_0, %c0_1] : memref<2x16x128xf32, #tpu.memory_space<vmem>>, vector<1x16x128xf32>
    %2 = vector.shape_cast %1 : vector<1x16x128xf32> to vector<16x128xf32>
    %c0_2 = arith.constant 0 : index
    %c0_3 = arith.constant 0 : index
    %c0_4 = arith.constant 0 : index
    %3 = vector.load %arg2[%c0_2, %c0_3, %c0_4] : memref<2x1x128xf32, #tpu.memory_space<vmem>>, vector<1x1x128xf32>
    %4 = vector.shape_cast %3 : vector<1x1x128xf32> to vector<1x128xf32>
    %c0_5 = arith.constant 0 : index
    %c0_6 = arith.constant 0 : index
    %c0_7 = arith.constant 0 : index
    %5 = vector.load %arg3[%c0_5, %c0_6, %c0_7] : memref<2x1x128xf32, #tpu.memory_space<vmem>>, vector<1x1x128xf32>
    %6 = vector.shape_cast %5 : vector<1x1x128xf32> to vector<1x128xf32>
    %cst_8 = arith.constant dense<0.000000e+00> : vector<128xf32>
    %7 = vector.multi_reduction <add>, %2, %cst_8 [0] : vector<16x128xf32> to vector<128xf32>
    %8 = vector.shape_cast %7 : vector<128xf32> to vector<1x128xf32>
    %cst_9 = arith.constant 6.250000e-02 : f32
    %9 = vector.broadcast %cst_9 : f32 to vector<1x128xf32>
    %10 = arith.mulf %8, %9 : vector<1x128xf32>
    %11 = vector.broadcast %10 : vector<1x128xf32> to vector<16x128xf32>
    %12 = arith.subf %2, %11 : vector<16x128xf32>
    %13 = arith.mulf %12, %12 : vector<16x128xf32>
    %cst_10 = arith.constant dense<0.000000e+00> : vector<128xf32>
    %14 = vector.multi_reduction <add>, %13, %cst_10 [0] : vector<16x128xf32> to vector<128xf32>
    %15 = vector.shape_cast %14 : vector<128xf32> to vector<1x128xf32>
    %cst_11 = arith.constant 6.250000e-02 : f32
    %16 = vector.broadcast %cst_11 : f32 to vector<1x128xf32>
    %17 = arith.mulf %15, %16 : vector<1x128xf32>
    %18 = vector.broadcast %10 : vector<1x128xf32> to vector<16x128xf32>
    %19 = arith.subf %2, %18 : vector<16x128xf32>
    %cst_12 = arith.constant 9.99999974E-6 : f32
    %20 = vector.broadcast %cst_12 : f32 to vector<1x128xf32>
    %21 = arith.addf %17, %20 : vector<1x128xf32>
    %22 = math.rsqrt %21 : vector<1x128xf32>
    %23 = vector.broadcast %22 : vector<1x128xf32> to vector<16x128xf32>
    %24 = arith.mulf %19, %23 : vector<16x128xf32>
    %25 = vector.broadcast %4 : vector<1x128xf32> to vector<16x128xf32>
    %26 = arith.mulf %24, %25 : vector<16x128xf32>
    %27 = vector.broadcast %6 : vector<1x128xf32> to vector<16x128xf32>
    %28 = arith.addf %26, %27 : vector<16x128xf32>
    %c0_13 = arith.constant 0 : index
    %c0_14 = arith.constant 0 : index
    %c0_15 = arith.constant 0 : index
    %29 = vector.load %arg4[%c0_13, %c0_14, %c0_15] : memref<2x128x128xf32, #tpu.memory_space<vmem>>, vector<1x128x128xf32>
    %30 = vector.shape_cast %29 : vector<1x128x128xf32> to vector<128x128xf32>
    %cst_16 = arith.constant dense<0.000000e+00> : vector<16x128xf32>
    %31 = tpu.matmul %28, %30, %cst_16 {dimension_numbers = #tpu.dot_dimension_numbers<[1], [0], [0], [1], [0, 0, 1, 1], [], []>} : vector<16x128xf32>, vector<128x128xf32>, vector<16x128xf32> -> vector<16x128xf32>
    %c0_17 = arith.constant 0 : index
    %c0_18 = arith.constant 0 : index
    %c0_19 = arith.constant 0 : index
    %32 = vector.load %arg5[%c0_17, %c0_18, %c0_19] : memref<2x1x128xf32, #tpu.memory_space<vmem>>, vector<1x1x128xf32>
    %33 = vector.shape_cast %32 : vector<1x1x128xf32> to vector<1x128xf32>
    %34 = vector.broadcast %33 : vector<1x128xf32> to vector<16x128xf32>
    %35 = arith.addf %31, %34 : vector<16x128xf32>
    %cst_20 = arith.constant 0.000000e+00 : f32
    %36 = vector.broadcast %cst_20 : f32 to vector<16x128xf32>
    %37 = arith.maximumf %35, %36 : vector<16x128xf32>
    %c0_21 = arith.constant 0 : index
    %c0_22 = arith.constant 0 : index
    %c0_23 = arith.constant 0 : index
    %38 = vector.load %arg6[%c0_21, %c0_22, %c0_23] : memref<2x128x128xf32, #tpu.memory_space<vmem>>, vector<1x128x128xf32>
    %39 = vector.shape_cast %38 : vector<1x128x128xf32> to vector<128x128xf32>
    %cst_24 = arith.constant dense<0.000000e+00> : vector<16x128xf32>
    %40 = tpu.matmul %37, %39, %cst_24 {dimension_numbers = #tpu.dot_dimension_numbers<[1], [0], [0], [1], [0, 0, 1, 1], [], []>} : vector<16x128xf32>, vector<128x128xf32>, vector<16x128xf32> -> vector<16x128xf32>
    %c0_25 = arith.constant 0 : index
    %c0_26 = arith.constant 0 : index
    %c0_27 = arith.constant 0 : index
    %41 = vector.load %arg7[%c0_25, %c0_26, %c0_27] : memref<2x1x128xf32, #tpu.memory_space<vmem>>, vector<1x1x128xf32>
    %42 = vector.shape_cast %41 : vector<1x1x128xf32> to vector<1x128xf32>
    %43 = vector.broadcast %42 : vector<1x128xf32> to vector<16x128xf32>
    %44 = arith.addf %40, %43 : vector<16x128xf32>
    %c0_28 = arith.constant 0 : index
    %c0_29 = arith.constant 0 : index
    %c0_30 = arith.constant 0 : index
    %45 = vector.load %arg8[%c0_28, %c0_29, %c0_30] : memref<2x1x128xf32, #tpu.memory_space<vmem>>, vector<1x1x128xf32>
    %46 = vector.shape_cast %45 : vector<1x1x128xf32> to vector<1x128xf32>
    %c0_31 = arith.constant 0 : index
    %c0_32 = arith.constant 0 : index
    %c0_33 = arith.constant 0 : index
    %47 = vector.load %arg9[%c0_31, %c0_32, %c0_33] : memref<2x1x128xf32, #tpu.memory_space<vmem>>, vector<1x1x128xf32>
    %48 = vector.shape_cast %47 : vector<1x1x128xf32> to vector<1x128xf32>
    %cst_34 = arith.constant dense<0.000000e+00> : vector<16xf32>
    %49 = vector.multi_reduction <add>, %44, %cst_34 [1] : vector<16x128xf32> to vector<16xf32>
    %50 = vector.shape_cast %49 : vector<16xf32> to vector<16x1xf32>
    %cst_35 = arith.constant 3.125000e-02 : f32
    %51 = vector.broadcast %cst_35 : f32 to vector<16x1xf32>
    %52 = arith.mulf %50, %51 : vector<16x1xf32>
    %53 = arith.mulf %44, %44 : vector<16x128xf32>
    %cst_36 = arith.constant dense<0.000000e+00> : vector<16xf32>
    %54 = vector.multi_reduction <add>, %53, %cst_36 [1] : vector<16x128xf32> to vector<16xf32>
    %55 = vector.shape_cast %54 : vector<16xf32> to vector<16x1xf32>
    %cst_37 = arith.constant 3.125000e-02 : f32
    %56 = vector.broadcast %cst_37 : f32 to vector<16x1xf32>
    %57 = arith.mulf %55, %56 : vector<16x1xf32>
    %58 = arith.mulf %52, %52 : vector<16x1xf32>
    %59 = arith.subf %57, %58 : vector<16x1xf32>
    %cst_38 = arith.constant 0.000000e+00 : f32
    %60 = vector.broadcast %cst_38 : f32 to vector<16x1xf32>
    %61 = arith.maximumf %59, %60 : vector<16x1xf32>
    %62 = vector.broadcast %52 : vector<16x1xf32> to vector<16x128xf32>
    %63 = arith.subf %44, %62 : vector<16x128xf32>
    %cst_39 = arith.constant 9.99999974E-6 : f32
    %64 = vector.broadcast %cst_39 : f32 to vector<16x1xf32>
    %65 = arith.addf %61, %64 : vector<16x1xf32>
    %66 = math.rsqrt %65 : vector<16x1xf32>
    %67 = vector.broadcast %66 : vector<16x1xf32> to vector<16x128xf32>
    %68 = arith.mulf %63, %67 : vector<16x128xf32>
    %69 = vector.broadcast %46 : vector<1x128xf32> to vector<16x128xf32>
    %70 = arith.mulf %68, %69 : vector<16x128xf32>
    %71 = vector.broadcast %48 : vector<1x128xf32> to vector<16x128xf32>
    %72 = arith.addf %70, %71 : vector<16x128xf32>
    %73 = arith.addf %0, %72 : vector<16x128xf32>
    %c1 = arith.constant 1 : index
    %c0_40 = arith.constant 0 : index
    %c0_41 = arith.constant 0 : index
    %74 = vector.load %arg1[%c1, %c0_40, %c0_41] : memref<2x16x128xf32, #tpu.memory_space<vmem>>, vector<1x16x128xf32>
    %75 = vector.shape_cast %74 : vector<1x16x128xf32> to vector<16x128xf32>
    %c1_42 = arith.constant 1 : index
    %c0_43 = arith.constant 0 : index
    %c0_44 = arith.constant 0 : index
    %76 = vector.load %arg2[%c1_42, %c0_43, %c0_44] : memref<2x1x128xf32, #tpu.memory_space<vmem>>, vector<1x1x128xf32>
    %77 = vector.shape_cast %76 : vector<1x1x128xf32> to vector<1x128xf32>
    %c1_45 = arith.constant 1 : index
    %c0_46 = arith.constant 0 : index
    %c0_47 = arith.constant 0 : index
    %78 = vector.load %arg3[%c1_45, %c0_46, %c0_47] : memref<2x1x128xf32, #tpu.memory_space<vmem>>, vector<1x1x128xf32>
    %79 = vector.shape_cast %78 : vector<1x1x128xf32> to vector<1x128xf32>
    %cst_48 = arith.constant dense<0.000000e+00> : vector<128xf32>
    %80 = vector.multi_reduction <add>, %75, %cst_48 [0] : vector<16x128xf32> to vector<128xf32>
    %81 = vector.shape_cast %80 : vector<128xf32> to vector<1x128xf32>
    %cst_49 = arith.constant 6.250000e-02 : f32
    %82 = vector.broadcast %cst_49 : f32 to vector<1x128xf32>
    %83 = arith.mulf %81, %82 : vector<1x128xf32>
    %84 = vector.broadcast %83 : vector<1x128xf32> to vector<16x128xf32>
    %85 = arith.subf %75, %84 : vector<16x128xf32>
    %86 = arith.mulf %85, %85 : vector<16x128xf32>
    %cst_50 = arith.constant dense<0.000000e+00> : vector<128xf32>
    %87 = vector.multi_reduction <add>, %86, %cst_50 [0] : vector<16x128xf32> to vector<128xf32>
    %88 = vector.shape_cast %87 : vector<128xf32> to vector<1x128xf32>
    %cst_51 = arith.constant 6.250000e-02 : f32
    %89 = vector.broadcast %cst_51 : f32 to vector<1x128xf32>
    %90 = arith.mulf %88, %89 : vector<1x128xf32>
    %91 = vector.broadcast %83 : vector<1x128xf32> to vector<16x128xf32>
    %92 = arith.subf %75, %91 : vector<16x128xf32>
    %cst_52 = arith.constant 9.99999974E-6 : f32
    %93 = vector.broadcast %cst_52 : f32 to vector<1x128xf32>
    %94 = arith.addf %90, %93 : vector<1x128xf32>
    %95 = math.rsqrt %94 : vector<1x128xf32>
    %96 = vector.broadcast %95 : vector<1x128xf32> to vector<16x128xf32>
    %97 = arith.mulf %92, %96 : vector<16x128xf32>
    %98 = vector.broadcast %77 : vector<1x128xf32> to vector<16x128xf32>
    %99 = arith.mulf %97, %98 : vector<16x128xf32>
    %100 = vector.broadcast %79 : vector<1x128xf32> to vector<16x128xf32>
    %101 = arith.addf %99, %100 : vector<16x128xf32>
    %c1_53 = arith.constant 1 : index
    %c0_54 = arith.constant 0 : index
    %c0_55 = arith.constant 0 : index
    %102 = vector.load %arg4[%c1_53, %c0_54, %c0_55] : memref<2x128x128xf32, #tpu.memory_space<vmem>>, vector<1x128x128xf32>
    %103 = vector.shape_cast %102 : vector<1x128x128xf32> to vector<128x128xf32>
    %cst_56 = arith.constant dense<0.000000e+00> : vector<16x128xf32>
    %104 = tpu.matmul %101, %103, %cst_56 {dimension_numbers = #tpu.dot_dimension_numbers<[1], [0], [0], [1], [0, 0, 1, 1], [], []>} : vector<16x128xf32>, vector<128x128xf32>, vector<16x128xf32> -> vector<16x128xf32>
    %c1_57 = arith.constant 1 : index
    %c0_58 = arith.constant 0 : index
    %c0_59 = arith.constant 0 : index
    %105 = vector.load %arg5[%c1_57, %c0_58, %c0_59] : memref<2x1x128xf32, #tpu.memory_space<vmem>>, vector<1x1x128xf32>
    %106 = vector.shape_cast %105 : vector<1x1x128xf32> to vector<1x128xf32>
    %107 = vector.broadcast %106 : vector<1x128xf32> to vector<16x128xf32>
    %108 = arith.addf %104, %107 : vector<16x128xf32>
    %cst_60 = arith.constant 0.000000e+00 : f32
    %109 = vector.broadcast %cst_60 : f32 to vector<16x128xf32>
    %110 = arith.maximumf %108, %109 : vector<16x128xf32>
    %c1_61 = arith.constant 1 : index
    %c0_62 = arith.constant 0 : index
    %c0_63 = arith.constant 0 : index
    %111 = vector.load %arg6[%c1_61, %c0_62, %c0_63] : memref<2x128x128xf32, #tpu.memory_space<vmem>>, vector<1x128x128xf32>
    %112 = vector.shape_cast %111 : vector<1x128x128xf32> to vector<128x128xf32>
    %cst_64 = arith.constant dense<0.000000e+00> : vector<16x128xf32>
    %113 = tpu.matmul %110, %112, %cst_64 {dimension_numbers = #tpu.dot_dimension_numbers<[1], [0], [0], [1], [0, 0, 1, 1], [], []>} : vector<16x128xf32>, vector<128x128xf32>, vector<16x128xf32> -> vector<16x128xf32>
    %c1_65 = arith.constant 1 : index
    %c0_66 = arith.constant 0 : index
    %c0_67 = arith.constant 0 : index
    %114 = vector.load %arg7[%c1_65, %c0_66, %c0_67] : memref<2x1x128xf32, #tpu.memory_space<vmem>>, vector<1x1x128xf32>
    %115 = vector.shape_cast %114 : vector<1x1x128xf32> to vector<1x128xf32>
    %116 = vector.broadcast %115 : vector<1x128xf32> to vector<16x128xf32>
    %117 = arith.addf %113, %116 : vector<16x128xf32>
    %c1_68 = arith.constant 1 : index
    %c0_69 = arith.constant 0 : index
    %c0_70 = arith.constant 0 : index
    %118 = vector.load %arg8[%c1_68, %c0_69, %c0_70] : memref<2x1x128xf32, #tpu.memory_space<vmem>>, vector<1x1x128xf32>
    %119 = vector.shape_cast %118 : vector<1x1x128xf32> to vector<1x128xf32>
    %c1_71 = arith.constant 1 : index
    %c0_72 = arith.constant 0 : index
    %c0_73 = arith.constant 0 : index
    %120 = vector.load %arg9[%c1_71, %c0_72, %c0_73] : memref<2x1x128xf32, #tpu.memory_space<vmem>>, vector<1x1x128xf32>
    %121 = vector.shape_cast %120 : vector<1x1x128xf32> to vector<1x128xf32>
    %cst_74 = arith.constant dense<0.000000e+00> : vector<16xf32>
    %122 = vector.multi_reduction <add>, %117, %cst_74 [1] : vector<16x128xf32> to vector<16xf32>
    %123 = vector.shape_cast %122 : vector<16xf32> to vector<16x1xf32>
    %cst_75 = arith.constant 3.125000e-02 : f32
    %124 = vector.broadcast %cst_75 : f32 to vector<16x1xf32>
    %125 = arith.mulf %123, %124 : vector<16x1xf32>
    %126 = arith.mulf %117, %117 : vector<16x128xf32>
    %cst_76 = arith.constant dense<0.000000e+00> : vector<16xf32>
    %127 = vector.multi_reduction <add>, %126, %cst_76 [1] : vector<16x128xf32> to vector<16xf32>
    %128 = vector.shape_cast %127 : vector<16xf32> to vector<16x1xf32>
    %cst_77 = arith.constant 3.125000e-02 : f32
    %129 = vector.broadcast %cst_77 : f32 to vector<16x1xf32>
    %130 = arith.mulf %128, %129 : vector<16x1xf32>
    %131 = arith.mulf %125, %125 : vector<16x1xf32>
    %132 = arith.subf %130, %131 : vector<16x1xf32>
    %cst_78 = arith.constant 0.000000e+00 : f32
    %133 = vector.broadcast %cst_78 : f32 to vector<16x1xf32>
    %134 = arith.maximumf %132, %133 : vector<16x1xf32>
    %135 = vector.broadcast %125 : vector<16x1xf32> to vector<16x128xf32>
    %136 = arith.subf %117, %135 : vector<16x128xf32>
    %cst_79 = arith.constant 9.99999974E-6 : f32
    %137 = vector.broadcast %cst_79 : f32 to vector<16x1xf32>
    %138 = arith.addf %134, %137 : vector<16x1xf32>
    %139 = math.rsqrt %138 : vector<16x1xf32>
    %140 = vector.broadcast %139 : vector<16x1xf32> to vector<16x128xf32>
    %141 = arith.mulf %136, %140 : vector<16x128xf32>
    %142 = vector.broadcast %119 : vector<1x128xf32> to vector<16x128xf32>
    %143 = arith.mulf %141, %142 : vector<16x128xf32>
    %144 = vector.broadcast %121 : vector<1x128xf32> to vector<16x128xf32>
    %145 = arith.addf %143, %144 : vector<16x128xf32>
    %146 = arith.addf %73, %145 : vector<16x128xf32>
    %c0_80 = arith.constant 0 : index
    %c0_81 = arith.constant 0 : index
    %147 = vector.load %arg10[%c0_80, %c0_81] : memref<16x128xf32, #tpu.memory_space<vmem>>, vector<16x128xf32>
    tpu.vector_store %arg10[%c0_80, %c0_81], %146 {strides = array<i32>} : memref<16x128xf32, #tpu.memory_space<vmem>>, vector<16x128xf32>,
    return
  }
  func.func @transform_0(%arg0: i32) -> (i32, i32, i32) {
    %c0_i32 = arith.constant 0 : i32
    %c0_i32_0 = arith.constant 0 : i32
    %c0_i32_1 = arith.constant 0 : i32
    %c0_i32_2 = arith.constant 0 : i32
    return %c0_i32, %c0_i32_0, %c0_i32_1 : i32, i32, i32
  }
  func.func @transform_1(%arg0: i32) -> (i32, i32, i32) {
    %c0_i32 = arith.constant 0 : i32
    %c0_i32_0 = arith.constant 0 : i32
    %c0_i32_1 = arith.constant 0 : i32
    %c0_i32_2 = arith.constant 0 : i32
    return %c0_i32, %c0_i32_0, %c0_i32_1 : i32, i32, i32
  }
  func.func @transform_2(%arg0: i32) -> (i32, i32, i32) {
    %c0_i32 = arith.constant 0 : i32
    %c0_i32_0 = arith.constant 0 : i32
    %c0_i32_1 = arith.constant 0 : i32
    %c0_i32_2 = arith.constant 0 : i32
    return %c0_i32, %c0_i32_0, %c0_i32_1 : i32, i32, i32
  }
  func.func @transform_3(%arg0: i32) -> (i32, i32, i32) {
    %c0_i32 = arith.constant 0 : i32
    %c0_i32_0 = arith.constant 0 : i32
    %c0_i32_1 = arith.constant 0 : i32
    %c0_i32_2 = arith.constant 0 : i32
    return %c0_i32, %c0_i32_0, %c0_i32_1 : i32, i32, i32
  }
  func.func @transform_4(%arg0: i32) -> (i32, i32, i32) {
    %c0_i32 = arith.constant 0 : i32
    %c0_i32_0 = arith.constant 0 : i32
    %c0_i32_1 = arith.constant 0 : i32
    %c0_i32_2 = arith.constant 0 : i32
    return %c0_i32, %c0_i32_0, %c0_i32_1 : i32, i32, i32
  }
  func.func @transform_5(%arg0: i32) -> (i32, i32, i32) {
    %c0_i32 = arith.constant 0 : i32
    %c0_i32_0 = arith.constant 0 : i32
    %c0_i32_1 = arith.constant 0 : i32
    %c0_i32_2 = arith.constant 0 : i32
    return %c0_i32, %c0_i32_0, %c0_i32_1 : i32, i32, i32
  }
  func.func @transform_6(%arg0: i32) -> (i32, i32, i32) {
    %c0_i32 = arith.constant 0 : i32
    %c0_i32_0 = arith.constant 0 : i32
    %c0_i32_1 = arith.constant 0 : i32
    %c0_i32_2 = arith.constant 0 : i32
    return %c0_i32, %c0_i32_0, %c0_i32_1 : i32, i32, i32
  }
  func.func @transform_7(%arg0: i32) -> (i32, i32, i32) {
    %c0_i32 = arith.constant 0 : i32
    %c0_i32_0 = arith.constant 0 : i32
    %c0_i32_1 = arith.constant 0 : i32
    %c0_i32_2 = arith.constant 0 : i32
    return %c0_i32, %c0_i32_0, %c0_i32_1 : i32, i32, i32
  }
  func.func @transform_8(%arg0: i32) -> (i32, i32, i32) {
    %c0_i32 = arith.constant 0 : i32
    %c0_i32_0 = arith.constant 0 : i32
    %c0_i32_1 = arith.constant 0 : i32
    %c0_i32_2 = arith.constant 0 : i32
    return %c0_i32, %c0_i32_0, %c0_i32_1 : i32, i32, i32
  }
  func.func @transform_9(%arg0: i32) -> (i32, i32) {
    %c0_i32 = arith.constant 0 : i32
    %c0_i32_0 = arith.constant 0 : i32
    %c0_i32_1 = arith.constant 0 : i32
    return %c0_i32, %c0_i32_0 : i32, i32
  }
}

</mosaic_0001>

<bundles_post_ra>
// kernel: graph_discriminator_forward.7
= control target key start
LH: loop header
LB: loop body
LE: loop exit
PB: predicated region body
PF: predicated region fallthrough
CT: control target
= control target key end

     0   :  { %v286_v0 = vmov 0.0|0.0   ;;  %vm287_vm0 = vmmov 0   ;;  %v288_v3 = vmov 0.0   ;;  %vm20_vm1 = vcmask 130048   ;;  %s377_s1 = inlined_call_operand.vmem [shape: f32[16,128], index: 1, kind: input, shape index: {}]   ;;  %s378_s2 = inlined_call_operand.vmem [shape: f32[128,128], index: 2, kind: input, shape index: {}]   ;;  %s379_s0 = inlined_call_operand.vmem [shape: f32[2,16], index: 0, kind: input, shape index: {}]   ;;  %s380_s3 = inlined_call_operand.vmem [shape: f32[1,128], index: 3, kind: input, shape index: {}]   ;;  %s381_s4 = inlined_call_operand.vmem [shape: f32[2,128], index: 4, kind: output, shape index: {}]  }
   0x1   :  { %256 = vmatprep.subr.bf16.mxu0 %v286_v0  ;;  %v18_v1 = vld [vmem:[%s377_s1] sm:$0xff]  ;;  %v19_v2 = vld [vmem:[%s377_s1 + $0x8] sm:$0xff]  ;;  %218 = vmatprep.mubr.msk.f32.mxu0 %vm287_vm0, %v288_v3  ;;  %v96_v7 = vld [vmem:[%s378_s2 + $0x10] sm:$0xff] }
   0x2   :  { %v257_v4 = vpack.c.bf16 %v19_v2, %v18_v1  ;;  %259 = vmatprep.subr.bf16.mxu1 %v286_v0  ;;  %v94_v5 = vld [vmem:[%s378_s2] sm:$0xff]  ;;  %v95_v6 = vld [vmem:[%s378_s2 + $0x8] sm:$0xff]  ;;  %253 = vmatprep.mubr.msk.f32.mxu1 %vm287_vm0, %v288_v3  ;;  %v97_v9 = vld [vmem:[%s378_s2 + $0x18] sm:$0xff] }
   0x3   :  { %v260_v8 = vpack.c.bf16 %v95_v6, %v94_v5  ;;  %v17_v10 = vld [vmem:[%s379_s0] sm:$0x3]  ;;  %v263_v11 = vpack.c.bf16 %v97_v9, %v96_v7  ;;  %v99_v13 = vld [vmem:[%s378_s2 + $0x28] sm:$0xff]  ;;  %v100_v15 = vld [vmem:[%s378_s2 + $0x30] sm:$0xff] }
   0x4   :  { %258 = vmatpush3.bf16.msra.mxu0 %v257_v4  ;;  %v98_v12 = vld [vmem:[%s378_s2 + $0x20] sm:$0xff]  ;;  %v101_v16 = vld [vmem:[%s378_s2 + $0x38] sm:$0xff]  ;;  %v103_v19 = vld [vmem:[%s378_s2 + $0x48] sm:$0xff] }
   0x5   :  { %261 = vmatpush3.bf16.msra.mxu1 %v260_v8  ;;  %v266_v14 = vpack.c.bf16 %v99_v13, %v98_v12  ;;  %v269_v17 = vpack.c.bf16 %v101_v16, %v100_v15  ;;  %v102_v18 = vld [vmem:[%s378_s2 + $0x40] sm:$0xff]  ;;  %v104_v21 = vld [vmem:[%s378_s2 + $0x50] sm:$0xff]  ;;  %v105_v22 = vld [vmem:[%s378_s2 + $0x58] sm:$0xff] }
   0x6   :  { %262 = vmatprep.subr.bf16.mxu1 %v286_v0  ;;  %v272_v20 = vpack.c.bf16 %v103_v19, %v102_v18  ;;  %v275_v23 = vpack.c.bf16 %v105_v22, %v104_v21  ;;  %v106_v24 = vld [vmem:[%s378_s2 + $0x60] sm:$0xff]  ;;  %v107_v25 = vld [vmem:[%s378_s2 + $0x68] sm:$0xff]  ;;  %v108_v27 = vld [vmem:[%s378_s2 + $0x70] sm:$0xff] }
   0x7   :  { %219 = vmatmul.mubr.msk.f32.vlgmr.msra.gmra.mrb[0].mxu0 %vm20_vm1, %v17_v10  ;;  %v278_v26 = vpack.c.bf16 %v107_v25, %v106_v24  ;;  %v109_v28 = vld [vmem:[%s378_s2 + $0x78] sm:$0xff]  ;;  %v193_v32 = vld [vmem:[%s380_s3] ss:$0 sm:$0xff] }
   0x8   :  { %v281_v29 = vpack.c.bf16 %v109_v28, %v108_v27 }
   0x9   :  { %264 = vmatpush3.bf16.msra.mxu1 %v263_v11 }
   0xa   :  { %265 = vmatprep.subr.bf16.mxu1 %v286_v0 }
   0xd   :  { %267 = vmatpush3.bf16.msra.mxu1 %v266_v14 }
   0xe   :  { %268 = vmatprep.subr.bf16.mxu1 %v286_v0 }
  0x11   :  { %270 = vmatpush3.bf16.msra.mxu1 %v269_v17 }
  0x12   :  { %271 = vmatprep.subr.bf16.mxu1 %v286_v0 }
  0x15   :  { %273 = vmatpush3.bf16.msra.mxu1 %v272_v20 }
  0x16   :  { %274 = vmatprep.subr.bf16.mxu1 %v286_v0 }
  0x19   :  { %276 = vmatpush3.bf16.msra.mxu1 %v275_v23 }
  0x1a   :  { %277 = vmatprep.subr.bf16.mxu1 %v286_v0 }
  0x1d   :  { %279 = vmatpush3.bf16.msra.mxu1 %v278_v26 }
  0x1e   :  { %280 = vmatprep.subr.bf16.mxu1 %v286_v0 }
  0x21   :  { %282 = vmatpush3.bf16.msra.mxu1 %v281_v29 }
  0xda   :  { %v90_v30 = vpop.f32.mrb[0].mxu0 }
  0xdb   :  { %v220_v31 = vpop.f32.mrb[1].mxu0  ;;  %254 = vmatmul.mubr.f32.vlgmr.msra.gmra.mrb[0].mxu1 %v90_v30 }
 0x1ae   :  { %v183_v33 = vpop.f32.mrb[0].mxu1 }
 0x1af   :  { %v184_v34 = vadd.f32 %v193_v32, %v183_v33  ;;  %v255_v35 = vpop.f32.mrb[1].mxu1 }
 0x1b1   :  { %187 = vst [vmem:[%s381_s4] sm:$0x3] %v184_v34 }

// kernel: graph_discriminator_forward.4
= control target key start
LH: loop header
LB: loop body
LE: loop exit
PB: predicated region body
PF: predicated region fallthrough
CT: control target
= control target key end

     0   :  { %14 = vsyncpa [#allocation3], 0  ;;  %s1057_s30 = smov [#allocation2]   ;;  %s1301_s0 = inlined_call_operand.vmem [shape: f32[2,16,128], index: 0, kind: input, shape index: {}]   ;;  %s1302_s1 = inlined_call_operand.vmem [shape: f32[2,1,128], index: 1, kind: input, shape index: {}]   ;;  %s1303_s2 = inlined_call_operand.vmem [shape: f32[2,1,128], index: 2, kind: input, shape index: {}]   ;;  %s1304_s3 = inlined_call_operand.vmem [shape: f32[2,128,128], index: 3, kind: input, shape index: {}]   ;;  %s1305_s4 = inlined_call_operand.vmem [shape: f32[2,1,128], index: 4, kind: input, shape index: {}]   ;;  %s1306_s5 = inlined_call_operand.hbm [shape: f32[2,128,128], index: 5, kind: input, shape index: {}]   ;;  %s1307_s6 = inlined_call_operand.vmem [shape: f32[2,1,128], index: 6, kind: input, shape index: {}]   ;;  %s1308_s7 = inlined_call_operand.vmem [shape: f32[2,1,128], index: 7, kind: input, shape index: {}]   ;;  %s1309_s8 = inlined_call_operand.vmem [shape: f32[2,1,128], index: 8, kind: input, shape index: {}]   ;;  %s1310_s9 = inlined_call_operand.vmem [shape: f32[16,128], index: 9, kind: output, shape index: {}]  }
   0x1   :  { %s30_s10 = sshll.u32 %s1057_s30, 4  ;;  %s1033_s13 = scalar_lea.hbm %s1306_s5, 4096  ;;  %s31_s10 = int_to_ptr.vmem [resolvable:$true] %s30_s10 }
   0x2   :  { %p1034_p0 = scmp.ne.s32.totalorder %s1306_s5, %s1033_s13  ;;  %p1037_p1 = scmp.lt.u32.totalorder %s1033_s13, %s1306_s5 }
   0x4   :  { %p1039_p2 = pnand %p1037_p1, %p1034_p0 }
   0x6   :  { %1042 = shalt.err (!%p1039_p2)
}
   0x7   :  { %s1043_s18 = scalar_lea.vmem %s31_s10, 4096  ;;  %p1048_p4 = scmp.lt.s32.totalorder %s31_s10, %s31_s10 }
   0x8   :  { %p1044_p3 = scmp.ne.s32.totalorder %s31_s10, %s1043_s18  ;;  %p1049_p5 = scmp.lt.s32.totalorder %s1043_s18, %s1043_s18 }
   0xa   :  { %p1050_p6 = por %p1049_p5, %p1048_p4 }
   0xc   :  { %p1051_p7 = pnand %p1050_p6, %p1044_p3 }
   0xe   :  { %1054 = shalt.err (!%p1051_p7)
}
   0xf   :  { %s1058_s19 = smov 128   ;;  %s1059_s20 = smov 8  }
  0x10   :  { %36 = dma.hbm_to_vmem [thread:$0]  %s1306_s5, 4096, %s31_s10, [#allocation3], %s1058_s19, %s1058_s19, %s1059_s20  }
  0x11   :  { %1055 = dma.done.wait [#allocation3], 4096  }
  0x12   :  { %1056 = vsyncadd [#allocation3], 4294963200  ;;  %v90_v0 = vld [vmem:[%s1304_s3] sm:$0xff]  ;;  %v91_v1 = vld [vmem:[%s1304_s3 + $0x8] sm:$0xff] }
  0x13   :  { %v92_v2 = vld [vmem:[%s1304_s3 + $0x10] sm:$0xff]  ;;  %v890_v3 = vpack.c.bf16 %v91_v1, %v90_v0  ;;  %v93_v4 = vld [vmem:[%s1304_s3 + $0x18] sm:$0xff]  ;;  %v94_v6 = vld [vmem:[%s1304_s3 + $0x20] sm:$0xff] }
  0x14   :  { %v894_v5 = vpack.c.bf16 %v93_v4, %v92_v2  ;;  %v95_v7 = vld [vmem:[%s1304_s3 + $0x28] sm:$0xff]  ;;  %v46_v9 = vld [vmem:[%s1301_s0] sm:$0xff]  ;;  %v96_v11 = vld [vmem:[%s1304_s3 + $0x30] sm:$0xff] }
  0x15   :  { %891 = vmatprep.subr.bf16.mxu0 %v890_v3  ;;  %v898_v8 = vpack.c.bf16 %v95_v7, %v94_v6  ;;  %v47_v10 = vld [vmem:[%s1301_s0 + $0x8] sm:$0xff]  ;;  %v97_v12 = vld [vmem:[%s1304_s3 + $0x38] sm:$0xff]  ;;  %v98_v16 = vld [vmem:[%s1304_s3 + $0x40] sm:$0xff] }
  0x16   :  { %893 = vmatpush3.bf16.msra.mxu0 %v890_v3  ;;  %v50_v13 = vadd.f32 %v47_v10, %v46_v9  ;;  %v902_v15 = vpack.c.bf16 %v97_v12, %v96_v11  ;;  %v99_v17 = vld [vmem:[%s1304_s3 + $0x48] sm:$0xff]  ;;  %v1161_v20 = vld [vmem:[%s1301_s0 + $0x10] sm:$0xff]  ;;  %v1166_v21 = vld [vmem:[%s1301_s0 + $0x18] sm:$0xff] }
  0x17   :  { %895 = vmatprep.subr.bf16.mxu0 %v894_v5  ;;  %v906_v22 = vpack.c.bf16 %v99_v17, %v98_v16  ;;  %v100_v23 = vld [vmem:[%s1304_s3 + $0x50] sm:$0xff]  ;;  %v343_v24 = vadd.f32 %v1166_v21, %v1161_v20  ;;  %v190_v25 = vld [vmem:[#allocation2] sm:$0xff]  ;;  %v191_v26 = vld [vmem:[#allocation2 + $0x8] sm:$0xff] }
  0x18   :  { %v51_v14 = vrot.slane %v50_v13, 4  ;;  %v101_v27 = vld [vmem:[%s1304_s3 + $0x58] sm:$0xff]  ;;  %v922_v29 = vpack.c.bf16 %v191_v26, %v190_v25  ;;  %v192_v30 = vld [vmem:[#allocation2 + $0x10] sm:$0xff]  ;;  %v194_v34 = vld [vmem:[#allocation2 + $0x20] sm:$0xff] }
  0x19   :  { %v193_v31 = vld [vmem:[#allocation2 + $0x18] sm:$0xff]  ;;  %v344_v32 = vrot.slane %v343_v24, 4  ;;  %v195_v35 = vld [vmem:[#allocation2 + $0x28] sm:$0xff]  ;;  %v910_v37 = vpack.c.bf16 %v101_v27, %v100_v23  ;;  %v102_v39 = vld [vmem:[%s1304_s3 + $0x60] sm:$0xff] }
  0x1a   :  { %897 = vmatpush3.bf16.msra.mxu0 %v894_v5  ;;  %v52_v18 = vadd.f32 %v51_v14, %v50_v13  ;;  %v926_v33 = vpack.c.bf16 %v193_v31, %v192_v30  ;;  %923 = vmatprep.subr.bf16.mxu1 %v922_v29  ;;  %v103_v40 = vld [vmem:[%s1304_s3 + $0x68] sm:$0xff]  ;;  %v930_v42 = vpack.c.bf16 %v195_v35, %v194_v34  ;;  %v196_v44 = vld [vmem:[#allocation2 + $0x30] sm:$0xff]  ;;  %v197_v45 = vld [vmem:[#allocation2 + $0x38] sm:$0xff] }
  0x1b   :  { %899 = vmatprep.subr.bf16.mxu0 %v898_v8  ;;  %v345_v38 = vadd.f32 %v344_v32, %v343_v24  ;;  %925 = vmatpush3.bf16.msra.mxu1 %v922_v29  ;;  %v914_v47 = vpack.c.bf16 %v103_v40, %v102_v39  ;;  %v104_v49 = vld [vmem:[%s1304_s3 + $0x70] sm:$0xff]  ;;  %v105_v50 = vld [vmem:[%s1304_s3 + $0x78] sm:$0xff]  ;;  %v934_v53 = vpack.c.bf16 %v197_v45, %v196_v44  ;;  %v198_v55 = vld [vmem:[#allocation2 + $0x40] sm:$0xff] }
  0x1c   :  { %v53_v19 = vrot.slane %v52_v18, 2  ;;  %927 = vmatprep.subr.bf16.mxu1 %v926_v33  ;;  %v199_v56 = vld [vmem:[#allocation2 + $0x48] sm:$0xff]  ;;  %v918_v59 = vpack.c.bf16 %v105_v50, %v104_v49  ;;  %v654_v62 = vld [vmem:[%s1304_s3 + $0x80] sm:$0xff]  ;;  %v200_v2 = vld [vmem:[#allocation2 + $0x50] sm:$0xff] }
  0x1d   :  { %v346_v43 = vrot.slane %v345_v38, 2  ;;  %v655_v63 = vld [vmem:[%s1304_s3 + $0x88] sm:$0xff]  ;;  %v938_v0 = vpack.c.bf16 %v199_v56, %v198_v55  ;;  %v201_v3 = vld [vmem:[#allocation2 + $0x58] sm:$0xff]  ;;  %v202_v12 = vld [vmem:[#allocation2 + $0x60] sm:$0xff] }
  0x1e   :  { %901 = vmatpush3.bf16.msra.mxu0 %v898_v8  ;;  %v54_v28 = vadd.f32 %v53_v19, %v52_v18  ;;  %v954_v5 = vpack.c.bf16 %v655_v63, %v654_v62  ;;  %v203_v13 = vld [vmem:[#allocation2 + $0x68] sm:$0xff]  ;;  %v642_v31 = vld [vmem:[%s1302_s1] ss:$0 sm:$0xff]  ;;  %v652_v45 = vld [vmem:[%s1302_s1 + $0x1] ss:$0 sm:$0xff] }
  0x1f   :  { %903 = vmatprep.subr.bf16.mxu0 %v902_v15  ;;  %v347_v48 = vadd.f32 %v346_v43, %v345_v38  ;;  %929 = vmatpush3.bf16.msra.mxu1 %v926_v33  ;;  %v946_v17 = vpack.c.bf16 %v203_v13, %v202_v12  ;;  %v643_v34 = vld [vmem:[%s1303_s2] ss:$0 sm:$0xff]  ;;  %v657_v38 = vld [vmem:[%s1304_s3 + $0x98] sm:$0xff]  ;;  %v659_v44 = vld [vmem:[%s1304_s3 + $0xa8] sm:$0xff] }
  0x20   :  { %v55_v36 = vrot.slane %v54_v28, 1  ;;  %931 = vmatprep.subr.bf16.mxu1 %v930_v42  ;;  %v658_v43 = vld [vmem:[%s1304_s3 + $0xa0] sm:$0xff]  ;;  %v660_v50 = vld [vmem:[%s1304_s3 + $0xb0] sm:$0xff]  ;;  %v663_v55 = vld [vmem:[%s1304_s3 + $0xc8] sm:$0xff] }
  0x21   :  { %v348_v54 = vrot.slane %v347_v48, 1  ;;  %v668_v63 = vld [vmem:[%s1304_s3 + $0xf0] sm:$0xff] }
  0x22   :  { %905 = vmatpush3.bf16.msra.mxu0 %v902_v15  ;;  %v56_v41 = vadd.f32 %v55_v36, %v54_v28 }
  0x23   :  { %907 = vmatprep.subr.bf16.mxu0 %v906_v22  ;;  %v349_v60 = vadd.f32 %v348_v54, %v347_v48  ;;  %933 = vmatpush3.bf16.msra.mxu1 %v930_v42  ;;  %v962_v48 = vpack.c.bf16 %v659_v44, %v658_v43  ;;  %v662_v54 = vld [vmem:[%s1304_s3 + $0xc0] sm:$0xff] }
  0x24   :  { %v57_v46 = vmul.f32 0.0625, %v56_v41  ;;  %935 = vmatprep.subr.bf16.mxu1 %v934_v53  ;;  %v970_v56 = vpack.c.bf16 %v663_v55, %v662_v54 }
  0x25   :  { %v350_v1 = vmul.f32 0.0625, %v349_v60  ;;  %v666_v60 = vld [vmem:[%s1304_s3 + $0xe0] sm:$0xff] }
  0x26   :  { %909 = vmatpush3.bf16.msra.mxu0 %v906_v22  ;;  %v1188_v51 = vsub.f32 %v46_v9, %v57_v46  ;;  %v1190_v52 = vsub.f32 %v47_v10, %v57_v46  ;;  %v942_v9 = vpack.c.bf16 %v201_v3, %v200_v2 }
  0x27   :  { %911 = vmatprep.subr.bf16.mxu0 %v910_v37  ;;  %v351_v6 = vsub.f32 %v1161_v20, %v350_v1  ;;  %v1204_v7 = vsub.f32 %v1166_v21, %v350_v1  ;;  %937 = vmatpush3.bf16.msra.mxu1 %v934_v53 }
  0x28   :  { %v60_v57 = vmul.f32 %v1188_v51, %v1188_v51  ;;  %v61_v58 = vmul.f32 %v1190_v52, %v1190_v52  ;;  %939 = vmatprep.subr.bf16.mxu1 %v938_v0 }
  0x29   :  { %v353_v10 = vmul.f32 %v351_v6, %v351_v6  ;;  %v354_v11 = vmul.f32 %v1204_v7, %v1204_v7 }
  0x2a   :  { %913 = vmatpush3.bf16.msra.mxu0 %v910_v37  ;;  %v62_v61 = vadd.f32 %v61_v58, %v60_v57  ;;  %v656_v37 = vld [vmem:[%s1304_s3 + $0x90] sm:$0xff]  ;;  %v665_v58 = vld [vmem:[%s1304_s3 + $0xd8] sm:$0xff] }
  0x2b   :  { %915 = vmatprep.subr.bf16.mxu0 %v914_v47  ;;  %v355_v15 = vadd.f32 %v354_v11, %v353_v10  ;;  %941 = vmatpush3.bf16.msra.mxu1 %v938_v0  ;;  %v958_v41 = vpack.c.bf16 %v657_v38, %v656_v37  ;;  %v664_v57 = vld [vmem:[%s1304_s3 + $0xd0] sm:$0xff]  ;;  %v669_v0 = vld [vmem:[%s1304_s3 + $0xf8] sm:$0xff]  ;;  %v487_v10 = vld [vmem:[#allocation2 + $0x88] sm:$0xff] }
  0x2c   :  { %v63_v4 = vrot.slane %v62_v61, 4  ;;  %943 = vmatprep.subr.bf16.mxu1 %v942_v9  ;;  %v982_v2 = vpack.c.bf16 %v669_v0, %v668_v63  ;;  %v501_v37 = vld [vmem:[#allocation2 + $0xf8] sm:$0xff] }
  0x2d   :  { %v356_v18 = vrot.slane %v355_v15, 4 }
  0x2e   :  { %917 = vmatpush3.bf16.msra.mxu0 %v914_v47  ;;  %v64_v8 = vadd.f32 %v63_v4, %v62_v61  ;;  %v653_v47 = vld [vmem:[%s1303_s2 + $0x1] ss:$0 sm:$0xff]  ;;  %v667_v61 = vld [vmem:[%s1304_s3 + $0xe8] sm:$0xff] }
  0x2f   :  { %919 = vmatprep.subr.bf16.mxu0 %v918_v59  ;;  %v357_v20 = vadd.f32 %v356_v18, %v355_v15  ;;  %945 = vmatpush3.bf16.msra.mxu1 %v942_v9  ;;  %v978_v62 = vpack.c.bf16 %v667_v61, %v666_v60  ;;  %v486_v9 = vld [vmem:[#allocation2 + $0x80] sm:$0xff] }
  0x30   :  { %v65_v14 = vrot.slane %v64_v8, 2  ;;  %947 = vmatprep.subr.bf16.mxu1 %v946_v17  ;;  %v986_v11 = vpack.c.bf16 %v487_v10, %v486_v9 }
  0x31   :  { %v358_v22 = vrot.slane %v357_v20, 2 }
  0x32   :  { %921 = vmatpush3.bf16.msra.mxu0 %v918_v59  ;;  %v66_v16 = vadd.f32 %v65_v14, %v64_v8  ;;  %v974_v59 = vpack.c.bf16 %v665_v58, %v664_v57 }
  0x33   :  { %955 = vmatprep.subr.bf16.mxu0 %v954_v5  ;;  %v359_v24 = vadd.f32 %v358_v22, %v357_v20  ;;  %949 = vmatpush3.bf16.msra.mxu1 %v946_v17  ;;  %v489_v17 = vld [vmem:[#allocation2 + $0x98] sm:$0xff]  ;;  %v491_v22 = vld [vmem:[#allocation2 + $0xa8] sm:$0xff] }
  0x34   :  { %v67_v19 = vrot.slane %v66_v16, 1 }
  0x35   :  { %v360_v26 = vrot.slane %v359_v24, 1 }
  0x36   :  { %v68_v21 = vadd.f32 %v67_v19, %v66_v16  ;;  %v488_v16 = vld [vmem:[#allocation2 + $0x90] sm:$0xff] }
  0x37   :  { %v361_v27 = vadd.f32 %v360_v26, %v359_v24  ;;  %v990_v20 = vpack.c.bf16 %v489_v17, %v488_v16  ;;  %v492_v24 = vld [vmem:[#allocation2 + $0xb0] sm:$0xff] }
  0x38   :  { %v69_v23 = vmul.f32 0.0625, %v68_v21  ;;  %v490_v21 = vld [vmem:[#allocation2 + $0xa0] sm:$0xff] }
  0x39   :  { %v362_v28 = vmul.f32 0.0625, %v361_v27  ;;  %v494_v27 = vld [vmem:[#allocation2 + $0xc0] sm:$0xff] }
  0x3a   :  { %v70_v25 = vadd.f32 1e-05, %v69_v23  ;;  %v994_v23 = vpack.c.bf16 %v491_v22, %v490_v21 }
  0x3b   :  { %v363_v29 = vadd.f32 1e-05, %v362_v28  ;;  %v495_v28 = vld [vmem:[#allocation2 + $0xc8] sm:$0xff] }
  0x3c   :  { %1021 = vrsqrt.f32 %v70_v25  ;;  %v493_v25 = vld [vmem:[#allocation2 + $0xb8] sm:$0xff] }
  0x3d   :  { %1023 = vrsqrt.f32 %v363_v29  ;;  %v998_v26 = vpack.c.bf16 %v493_v25, %v492_v24  ;;  %v1002_v29 = vpack.c.bf16 %v495_v28, %v494_v27 }
  0x46   :  { %v1022_v30 = vpop.eup %1021 }
  0x47   :  { %v72_v32 = vmul.f32 %v1022_v30, %v1188_v51  ;;  %v73_v33 = vmul.f32 %v1022_v30, %v1190_v52  ;;  %v1024_v42 = vpop.eup %1023  ;;  %v661_v51 = vld [vmem:[%s1304_s3 + $0xb8] sm:$0xff]  ;;  %v496_v30 = vld [vmem:[#allocation2 + $0xd0] sm:$0xff] }
  0x48   :  { %v365_v46 = vmul.f32 %v1024_v42, %v351_v6  ;;  %v966_v53 = vpack.c.bf16 %v661_v51, %v660_v50  ;;  %v366_v1 = vmul.f32 %v1024_v42, %v1204_v7  ;;  %v205_v6 = vld [vmem:[#allocation2 + $0x78] sm:$0xff]  ;;  %v644_v7 = vld [vmem:[%s1305_s4] ss:$0 sm:$0xff] }
  0x49   :  { %v80_v35 = vmul.f32 %v642_v31, %v72_v32  ;;  %v81_v36 = vmul.f32 %v642_v31, %v73_v33  ;;  %v497_v31 = vld [vmem:[#allocation2 + $0xd8] sm:$0xff]  ;;  %v498_v33 = vld [vmem:[#allocation2 + $0xe0] sm:$0xff] }
  0x4a   :  { %v373_v49 = vmul.f32 %v652_v45, %v365_v46  ;;  %v374_v3 = vmul.f32 %v652_v45, %v366_v1  ;;  %v1006_v32 = vpack.c.bf16 %v497_v31, %v496_v30  ;;  %v645_v46 = vld [vmem:[%s1307_s6] ss:$0 sm:$0xff] }
  0x4b   :  { %v88_v39 = vadd.f32 %v643_v34, %v80_v35  ;;  %v89_v40 = vadd.f32 %v643_v34, %v81_v36  ;;  %v499_v34 = vld [vmem:[#allocation2 + $0xe8] sm:$0xff]  ;;  %v500_v36 = vld [vmem:[#allocation2 + $0xf0] sm:$0xff] }
  0x4c   :  { %v381_v52 = vadd.f32 %v653_v47, %v373_v49  ;;  %v382_v4 = vadd.f32 %v653_v47, %v374_v3  ;;  %v1010_v35 = vpack.c.bf16 %v499_v34, %v498_v33  ;;  %v1014_v38 = vpack.c.bf16 %v501_v37, %v500_v36  ;;  %v646_v36 = vld [vmem:[%s1308_s7] ss:$0 sm:$0xff]  ;;  %v676_v37 = vld [vmem:[%s1308_s7 + $0x1] ss:$0 sm:$0xff] }
  0x4d   :  { %782 = vmatprep.mubr.f32.mxu0 %v88_v39  ;;  %v671_v39 = vld [vmem:[%s1305_s4 + $0x1] ss:$0 sm:$0xff] }
  0x4e   :  { %783 = vmatmul.mubr.f32.vlgmr.msra.gmra.mrb[0].mxu0 %v89_v40 }
  0x4f   :  { %957 = vmatpush3.bf16.msra.mxu0 %v954_v5  ;;  %852 = vmatprep.mubr.f32.mxu0 %v381_v52  ;;  %v204_v5 = vld [vmem:[#allocation2 + $0x70] sm:$0xff] }
  0x50   :  { %959 = vmatprep.subr.bf16.mxu0 %v958_v41  ;;  %v950_v8 = vpack.c.bf16 %v205_v6, %v204_v5 }
  0x52   :  { %951 = vmatprep.subr.bf16.mxu1 %v950_v8 }
  0x53   :  { %961 = vmatpush3.bf16.msra.mxu0 %v958_v41  ;;  %953 = vmatpush3.bf16.msra.mxu1 %v950_v8 }
  0x54   :  { %963 = vmatprep.subr.bf16.mxu0 %v962_v48  ;;  %987 = vmatprep.subr.bf16.mxu1 %v986_v11 }
  0x57   :  { %965 = vmatpush3.bf16.msra.mxu0 %v962_v48 }
  0x58   :  { %967 = vmatprep.subr.bf16.mxu0 %v966_v53 }
  0x5b   :  { %969 = vmatpush3.bf16.msra.mxu0 %v966_v53  ;;  %v673_v53 = vld [vmem:[%s1307_s6 + $0x1] ss:$0 sm:$0xff] }
  0x5c   :  { %971 = vmatprep.subr.bf16.mxu0 %v970_v56 }
  0x5f   :  { %973 = vmatpush3.bf16.msra.mxu0 %v970_v56 }
  0x60   :  { %975 = vmatprep.subr.bf16.mxu0 %v974_v59 }
  0x63   :  { %977 = vmatpush3.bf16.msra.mxu0 %v974_v59 }
  0x64   :  { %979 = vmatprep.subr.bf16.mxu0 %v978_v62 }
  0x67   :  { %981 = vmatpush3.bf16.msra.mxu0 %v978_v62 }
  0x68   :  { %983 = vmatprep.subr.bf16.mxu0 %v982_v2 }
  0x6b   :  { %985 = vmatpush3.bf16.msra.mxu0 %v982_v2 }
  0x6e   :  { %853 = vmatmul.mubr.f32.vlgmr.msra.gmra.mrb[2].mxu0 %v382_v4 }
 0x121   :  { %v784_v12 = vpop.f32.mrb[0].mxu0 }
 0x122   :  { %v185_v13 = vadd.f32 %v784_v12, %v644_v7  ;;  %v179_v14 = vpop.f32.mrb[1].mxu0 }
 0x123   :  { %v180_v15 = vadd.f32 %v644_v7, %v179_v14 }
 0x124   :  { %v189_v19 = vmax.f32 %v185_v13, 0.0 }
 0x125   :  { %v188_v18 = vmax.f32 %v180_v15, 0.0 }
 0x127   :  { %817 = vmatprep.mubr.f32.mxu1 %v188_v18 }
 0x128   :  { %818 = vmatmul.mubr.f32.vlgmr.msra.gmra.mrb[0].mxu1 %v189_v19 }
 0x129   :  { %989 = vmatpush3.bf16.msra.mxu1 %v986_v11 }
 0x12a   :  { %991 = vmatprep.subr.bf16.mxu1 %v990_v20 }
 0x12d   :  { %993 = vmatpush3.bf16.msra.mxu1 %v990_v20 }
 0x12e   :  { %995 = vmatprep.subr.bf16.mxu1 %v994_v23 }
 0x131   :  { %997 = vmatpush3.bf16.msra.mxu1 %v994_v23 }
 0x132   :  { %999 = vmatprep.subr.bf16.mxu1 %v998_v26 }
 0x135   :  { %1001 = vmatpush3.bf16.msra.mxu1 %v998_v26 }
 0x136   :  { %1003 = vmatprep.subr.bf16.mxu1 %v1002_v29 }
 0x139   :  { %1005 = vmatpush3.bf16.msra.mxu1 %v1002_v29 }
 0x13a   :  { %1007 = vmatprep.subr.bf16.mxu1 %v1006_v32 }
 0x13d   :  { %1009 = vmatpush3.bf16.msra.mxu1 %v1006_v32 }
 0x13e   :  { %1011 = vmatprep.subr.bf16.mxu1 %v1010_v35 }
 0x141   :  { %v854_v40 = vpop.f32.mrb[2].mxu0  ;;  %1013 = vmatpush3.bf16.msra.mxu1 %v1010_v35 }
 0x142   :  { %v480_v41 = vadd.f32 %v854_v40, %v671_v39  ;;  %v474_v42 = vpop.f32.mrb[3].mxu0  ;;  %1015 = vmatprep.subr.bf16.mxu1 %v1014_v38 }
 0x143   :  { %v475_v43 = vadd.f32 %v671_v39, %v474_v42  ;;  %v677_v42 = vld [vmem:[%s1309_s8 + $0x1] ss:$0 sm:$0xff] }
 0x144   :  { %v484_v45 = vmax.f32 %v480_v41, 0.0 }
 0x145   :  { %v483_v44 = vmax.f32 %v475_v43, 0.0  ;;  %1017 = vmatpush3.bf16.msra.mxu1 %v1014_v38 }
 0x147   :  { %887 = vmatprep.mubr.f32.mxu1 %v483_v44 }
 0x148   :  { %888 = vmatmul.mubr.f32.vlgmr.msra.gmra.mrb[2].mxu1 %v484_v45 }
 0x1fb   :  { %v819_v47 = vpop.f32.mrb[0].mxu1 }
 0x1fc   :  { %v285_v48 = vadd.f32 %v819_v47, %v645_v46  ;;  %v279_v49 = vpop.f32.mrb[1].mxu1 }
 0x1fd   :  { %v280_v51 = vadd.f32 %v645_v46, %v279_v49  ;;  %v647_v46 = vld [vmem:[%s1309_s8] ss:$0 sm:$0xff] }
 0x1fe   :  { %292 = vadd.xlane.f32.xlu0 %v285_v48  ;;  %v297_v50 = vmul.f32 %v285_v48, %v285_v48 }
 0x1ff   :  { %v296_v52 = vmul.f32 %v280_v51, %v280_v51 }
 0x200   :  { %300 = vadd.xlane.f32.xlu1 %v297_v50 }
 0x202   :  { %290 = vadd.xlane.f32.xlu0 %v280_v51 }
 0x206   :  { %298 = vadd.xlane.f32.xlu0 %v296_v52 }
 0x21b   :  { %v889_v54 = vpop.f32.mrb[2].mxu1 }
 0x21c   :  { %v1277_v55 = vadd.f32 %v889_v54, %v673_v53  ;;  %v576_v56 = vpop.f32.mrb[3].mxu1 }
 0x21d   :  { %v577_v57 = vadd.f32 %v673_v53, %v576_v56 }
 0x21e   :  { %591 = vadd.xlane.f32.xlu1 %v1277_v55  ;;  %v596_v59 = vmul.f32 %v1277_v55, %v1277_v55 }
 0x21f   :  { %v595_v58 = vmul.f32 %v577_v57, %v577_v57 }
 0x221   :  { %597 = vadd.xlane.f32.xlu0 %v595_v58 }
 0x222   :  { %589 = vadd.xlane.f32.xlu1 %v577_v57 }
 0x226   :  { %599 = vadd.xlane.f32.xlu1 %v596_v59 }
 0x28b   :  { %v293_v60 = vpop.xlane.xlu0 %292 }
 0x28c   :  { %v295_v63 = vmul.f32 0.03125, %v293_v60 }
 0x28d   :  { %v301_v1 = vpop.xlane.xlu1 %300 }
 0x28e   :  { %v305_v3 = vmul.f32 %v295_v63, %v295_v63  ;;  %v303_v4 = vmul.f32 0.03125, %v301_v1  ;;  %v311_v31 = vsub.f32 %v285_v48, %v295_v63 }
 0x28f   :  { %v291_v61 = vpop.xlane.xlu0 %290 }
 0x290   :  { %v294_v0 = vmul.f32 0.03125, %v291_v61  ;;  %v307_v8 = vsub.f32 %v303_v4, %v305_v3 }
 0x292   :  { %v304_v5 = vmul.f32 %v294_v0, %v294_v0  ;;  %v309_v11 = vmax.f32 %v307_v8, 0.0  ;;  %v310_v29 = vsub.f32 %v280_v51, %v294_v0 }
 0x293   :  { %v299_v62 = vpop.xlane.xlu0 %298 }
 0x294   :  { %v302_v2 = vmul.f32 0.03125, %v299_v62  ;;  %v313_v16 = vadd.f32 1e-05, %v309_v11 }
 0x296   :  { %v306_v6 = vsub.f32 %v302_v2, %v304_v5 }
 0x298   :  { %v308_v10 = vmax.f32 %v306_v6, 0.0 }
 0x29a   :  { %v312_v13 = vadd.f32 1e-05, %v308_v10 }
 0x29c   :  { %1025 = vrsqrt.f32 %v312_v13 }
 0x29d   :  { %1027 = vrsqrt.f32 %v313_v16 }
 0x2a6   :  { %v1026_v28 = vpop.eup %1025 }
 0x2a7   :  { %v1028_v30 = vpop.eup %1027  ;;  %v316_v32 = vmul.f32 %v1026_v28, %v310_v29 }
 0x2a8   :  { %v317_v33 = vmul.f32 %v1028_v30, %v311_v31 }
 0x2a9   :  { %v324_v39 = vmul.f32 %v646_v36, %v316_v32 }
 0x2aa   :  { %v325_v43 = vmul.f32 %v646_v36, %v317_v33 }
 0x2ab   :  { %v592_v9 = vpop.xlane.xlu1 %591  ;;  %v332_v47 = vadd.f32 %v647_v46, %v324_v39 }
 0x2ac   :  { %v594_v14 = vmul.f32 0.03125, %v592_v9  ;;  %v333_v50 = vadd.f32 %v647_v46, %v325_v43 }
 0x2ae   :  { %v598_v7 = vpop.xlane.xlu0 %597  ;;  %v604_v20 = vmul.f32 %v594_v14, %v594_v14  ;;  %v610_v38 = vsub.f32 %v1277_v55, %v594_v14 }
 0x2af   :  { %v590_v12 = vpop.xlane.xlu1 %589  ;;  %v601_v17 = vmul.f32 0.03125, %v598_v7 }
 0x2b0   :  { %v593_v15 = vmul.f32 0.03125, %v590_v12 }
 0x2b2   :  { %v603_v18 = vmul.f32 %v593_v15, %v593_v15  ;;  %v609_v34 = vsub.f32 %v577_v57, %v593_v15 }
 0x2b3   :  { %v600_v19 = vpop.xlane.xlu1 %599 }
 0x2b4   :  { %v605_v21 = vsub.f32 %v601_v17, %v603_v18  ;;  %v602_v22 = vmul.f32 0.03125, %v600_v19 }
 0x2b6   :  { %v607_v23 = vmax.f32 %v605_v21, 0.0  ;;  %v606_v24 = vsub.f32 %v602_v22, %v604_v20 }
 0x2b8   :  { %v611_v25 = vadd.f32 1e-05, %v607_v23  ;;  %v608_v26 = vmax.f32 %v606_v24, 0.0 }
 0x2ba   :  { %1029 = vrsqrt.f32 %v611_v25  ;;  %v612_v27 = vadd.f32 1e-05, %v608_v26 }
 0x2bc   :  { %1031 = vrsqrt.f32 %v612_v27 }
 0x2c4   :  { %v1030_v35 = vpop.eup %1029 }
 0x2c5   :  { %v615_v40 = vmul.f32 %v1030_v35, %v609_v34 }
 0x2c6   :  { %v1032_v41 = vpop.eup %1031 }
 0x2c7   :  { %v623_v44 = vmul.f32 %v676_v37, %v615_v40  ;;  %v616_v45 = vmul.f32 %v1032_v41, %v610_v38 }
 0x2c9   :  { %v631_v48 = vadd.f32 %v677_v42, %v623_v44  ;;  %v624_v49 = vmul.f32 %v676_v37, %v616_v45 }
 0x2cb   :  { %v633_v51 = vadd.f32 %v631_v48, %v332_v47  ;;  %v632_v52 = vadd.f32 %v677_v42, %v624_v49 }
 0x2cd   :  { %635 = vst [vmem:[%s1310_s9] sm:$0xff] %v633_v51  ;;  %v634_v53 = vadd.f32 %v632_v52, %v333_v50 }
 0x2cf   :  { %636 = vst [vmem:[%s1310_s9 + $0x8] sm:$0xff] %v634_v53 }
 0x2d0   :  { %641 = vsyncpa [#allocation3], 1 }

// kernel: graph_discriminator_forward.5
= control target key start
LH: loop header
LB: loop body
LE: loop exit
PB: predicated region body
PF: predicated region fallthrough
CT: control target
= control target key end

     0   :  { %vm48_vm0 = vcmask 130048   ;;  %vm484_vm1 = vcmask 64512   ;;  %s2469_s29 = smov 64   ;;  %s2470_s30 = smov 88   ;;  %vm1307_vm3 = vcmask 195584   ;;  %vm1321_vm4 = vcmask 261120   ;;  %s2990_s0 = inlined_call_operand.vmem [shape: f32[16,128], index: 0, kind: input, shape index: {}]   ;;  %s2991_s1 = inlined_call_operand.vmem [shape: f32[16,16], index: 1, kind: input, shape index: {}]   ;;  %s2992_s3 = inlined_call_operand.vmem [shape: f32[2,128,128], index: 3, kind: input, shape index: {}]   ;;  %s2993_s5 = inlined_call_operand.vmem [shape: f32[128,96], index: 5, kind: input, shape index: {}]   ;;  %s2994_s4 = inlined_call_operand.vmem [shape: f32[2,1,128], index: 4, kind: input, shape index: {}]   ;;  %s2995_s6 = inlined_call_operand.vmem [shape: f32[1,96], index: 6, kind: input, shape index: {}]   ;;  %s2996_s2 = inlined_call_operand.vmem [shape: f32[16,16], index: 2, kind: input, shape index: {}]   ;;  %s2997_s7 = inlined_call_operand.vmem [shape: f32[32,128], index: 7, kind: input, shape index: {}]   ;;  %s2998_s9 = inlined_call_operand.vmem [shape: f32[2,128,128], index: 9, kind: input, shape index: {}]   ;;  %s2999_s8 = inlined_call_operand.vmem [shape: f32[1,128], index: 8, kind: input, shape index: {}]   ;;  %s3000_s11 = inlined_call_operand.vmem [shape: f32[3,1,128], index: 11, kind: input, shape index: {}]   ;;  %s3001_s12 = inlined_call_operand.vmem [shape: f32[3,1,128], index: 12, kind: input, shape index: {}]   ;;  %s3002_s10 = inlined_call_operand.vmem [shape: f32[2,1,128], index: 10, kind: input, shape index: {}]   ;;  %s3003_s13 = inlined_call_operand.vmem [shape: f32[16,128], index: 13, kind: output, shape index: {}]  }
   0x1   :  { %v2555_v0 = vld [vmem:[%s2990_s0] sm:$0xff]  ;;  %v2560_v1 = vld [vmem:[%s2990_s0 + $0x8] sm:$0xff]  ;;  %v134_v7 = vld [vmem:[%s2992_s3 + $0x10] sm:$0xff]  ;;  %s2472_s14 = smov 56   ;;  %s2473_s15 = smov 80  }
   0x2   :  { %v46_v2 = vld [vmem:[%s2991_s1] sm:$0xff]  ;;  %v2162_v3 = vpack.c.bf16 %v2560_v1, %v2555_v0  ;;  %v133_v5 = vld [vmem:[%s2992_s3 + $0x8] sm:$0xff]  ;;  %v135_v8 = vld [vmem:[%s2992_s3 + $0x18] sm:$0xff]  ;;  %s2474_s16 = smov 72   ;;  %s2476_s17 = smov 112  }
   0x3   :  { %1917 = vmatprep.mubr.msk.f32.mxu0 %vm48_vm0, %v46_v2  ;;  %v132_v4 = vld [vmem:[%s2992_s3] sm:$0xff]  ;;  %v2170_v9 = vpack.c.bf16 %v135_v8, %v134_v7  ;;  %v137_v11 = vld [vmem:[%s2992_s3 + $0x28] sm:$0xff]  ;;  %v138_v14 = vld [vmem:[%s2992_s3 + $0x30] sm:$0xff]  ;;  %s2477_s18 = smov 48   ;;  %s2478_s19 = smov 8  }
   0x4   :  { %v2166_v6 = vpack.c.bf16 %v133_v5, %v132_v4  ;;  %2163 = vmatprep.subr.bf16.mxu0 %v2162_v3  ;;  %v136_v10 = vld [vmem:[%s2992_s3 + $0x20] sm:$0xff]  ;;  %v47_v12 = vld [vmem:[%s2991_s1 + $0x8] sm:$0xff]  ;;  %v139_v15 = vld [vmem:[%s2992_s3 + $0x38] sm:$0xff]  ;;  %s2475_s1 = smov 104   ;;  %s2479_s20 = smov 40  }
   0x5   :  { %2165 = vmatpush3.bf16.msra.mxu0 %v2162_v3  ;;  %v2174_v13 = vpack.c.bf16 %v137_v11, %v136_v10  ;;  %v2178_v16 = vpack.c.bf16 %v139_v15, %v138_v14  ;;  %v140_v17 = vld [vmem:[%s2992_s3 + $0x40] sm:$0xff]  ;;  %v141_v18 = vld [vmem:[%s2992_s3 + $0x48] sm:$0xff]  ;;  %v142_v20 = vld [vmem:[%s2992_s3 + $0x50] sm:$0xff]  ;;  %s2481_s26 = smov 24  }
   0x6   :  { %2167 = vmatprep.subr.bf16.mxu1 %v2166_v6  ;;  %v2182_v19 = vpack.c.bf16 %v141_v18, %v140_v17  ;;  %v143_v21 = vld [vmem:[%s2992_s3 + $0x58] sm:$0xff]  ;;  %v144_v23 = vld [vmem:[%s2992_s3 + $0x60] sm:$0xff]  ;;  %v145_v24 = vld [vmem:[%s2992_s3 + $0x68] sm:$0xff] }
   0x7   :  { %2169 = vmatpush3.bf16.msra.mxu1 %v2166_v6  ;;  %v2186_v22 = vpack.c.bf16 %v143_v21, %v142_v20  ;;  %v2190_v25 = vpack.c.bf16 %v145_v24, %v144_v23  ;;  %v146_v26 = vld [vmem:[%s2992_s3 + $0x70] sm:$0xff]  ;;  %v147_v27 = vld [vmem:[%s2992_s3 + $0x78] sm:$0xff]  ;;  %v376_v29 = vld [vmem:[%s2993_s5] sm:$0xff] }
   0x8   :  { %2171 = vmatprep.subr.bf16.mxu1 %v2170_v9  ;;  %1918 = vmatmul.mubr.msk.f32.vlgmr.msra.gmra.mrb[0].mxu0 %vm48_vm0, %v47_v12  ;;  %v2194_v28 = vpack.c.bf16 %v147_v27, %v146_v26  ;;  %v377_v30 = vld [vmem:[%s2993_s5 + $0x8] sm:$0xff]  ;;  %v1706_v32 = vld [vmem:[%s2992_s3 + $0x80] sm:$0xff]  ;;  %v1708_v34 = vld [vmem:[%s2992_s3 + $0x90] sm:$0xff] }
   0x9   :  { %v2230_v31 = vpack.c.bf16 %v377_v30, %v376_v29  ;;  %v1707_v33 = vld [vmem:[%s2992_s3 + $0x88] sm:$0xff]  ;;  %v1709_v36 = vld [vmem:[%s2992_s3 + $0x98] sm:$0xff]  ;;  %v1710_v38 = vld [vmem:[%s2992_s3 + $0xa0] sm:$0xff] }
   0xa   :  { %v2198_v35 = vpack.c.bf16 %v1707_v33, %v1706_v32  ;;  %v2202_v37 = vpack.c.bf16 %v1709_v36, %v1708_v34  ;;  %v1711_v39 = vld [vmem:[%s2992_s3 + $0xa8] sm:$0xff]  ;;  %v1712_v41 = vld [vmem:[%s2992_s3 + $0xb0] sm:$0xff]  ;;  %v1713_v42 = vld [vmem:[%s2992_s3 + $0xb8] sm:$0xff] }
   0xb   :  { %2173 = vmatpush3.bf16.msra.mxu1 %v2170_v9  ;;  %v2206_v40 = vpack.c.bf16 %v1711_v39, %v1710_v38  ;;  %v2210_v43 = vpack.c.bf16 %v1713_v42, %v1712_v41  ;;  %v1714_v44 = vld [vmem:[%s2992_s3 + $0xc0] sm:$0xff]  ;;  %v1715_v45 = vld [vmem:[%s2992_s3 + $0xc8] sm:$0xff]  ;;  %v1716_v47 = vld [vmem:[%s2992_s3 + $0xd0] sm:$0xff] }
   0xc   :  { %2175 = vmatprep.subr.bf16.mxu1 %v2174_v13  ;;  %2199 = vmatprep.subr.bf16.mxu0 %v2198_v35  ;;  %v2214_v46 = vpack.c.bf16 %v1715_v45, %v1714_v44  ;;  %v1717_v48 = vld [vmem:[%s2992_s3 + $0xd8] sm:$0xff]  ;;  %v1718_v50 = vld [vmem:[%s2992_s3 + $0xe0] sm:$0xff]  ;;  %v1719_v51 = vld [vmem:[%s2992_s3 + $0xe8] sm:$0xff] }
   0xd   :  { %2201 = vmatpush3.bf16.msra.mxu0 %v2198_v35  ;;  %v2218_v49 = vpack.c.bf16 %v1717_v48, %v1716_v47  ;;  %v2222_v52 = vpack.c.bf16 %v1719_v51, %v1718_v50  ;;  %v378_v54 = vld [vmem:[%s2993_s5 + $0x10] sm:$0xff]  ;;  %v379_v55 = vld [vmem:[%s2993_s5 + $0x18] sm:$0xff]  ;;  %v380_v60 = vld [vmem:[%s2993_s5 + $0x20] sm:$0xff] }
   0xe   :  { %2203 = vmatprep.subr.bf16.mxu0 %v2202_v37  ;;  %v2234_v59 = vpack.c.bf16 %v379_v55, %v378_v54  ;;  %v381_v61 = vld [vmem:[%s2993_s5 + $0x28] sm:$0xff]  ;;  %v382_v63 = vld [vmem:[%s2993_s5 + $0x30] sm:$0xff]  ;;  %v383_v2 = vld [vmem:[%s2993_s5 + $0x38] sm:$0xff] }
   0xf   :  { %2177 = vmatpush3.bf16.msra.mxu1 %v2174_v13  ;;  %v2238_v62 = vpack.c.bf16 %v381_v61, %v380_v60  ;;  %v2242_v3 = vpack.c.bf16 %v383_v2, %v382_v63  ;;  %v384_v4 = vld [vmem:[%s2993_s5 + $0x40] sm:$0xff]  ;;  %v385_v5 = vld [vmem:[%s2993_s5 + $0x48] sm:$0xff]  ;;  %v386_v7 = vld [vmem:[%s2993_s5 + $0x50] sm:$0xff] }
  0x10   :  { %2179 = vmatprep.subr.bf16.mxu1 %v2178_v16  ;;  %v2246_v6 = vpack.c.bf16 %v385_v5, %v384_v4  ;;  %v387_v8 = vld [vmem:[%s2993_s5 + $0x58] sm:$0xff]  ;;  %v388_v10 = vld [vmem:[%s2993_s5 + $0x60] sm:$0xff]  ;;  %v389_v11 = vld [vmem:[%s2993_s5 + $0x68] sm:$0xff] }
  0x11   :  { %2205 = vmatpush3.bf16.msra.mxu0 %v2202_v37  ;;  %v2250_v9 = vpack.c.bf16 %v387_v8, %v386_v7  ;;  %v2254_v12 = vpack.c.bf16 %v389_v11, %v388_v10  ;;  %v390_v13 = vld [vmem:[%s2993_s5 + $0x70] sm:$0xff]  ;;  %v391_v14 = vld [vmem:[%s2993_s5 + $0x78] sm:$0xff]  ;;  %v1726_v26 = vld [vmem:[%s2995_s6] ss:$0 sm:$0xff] }
  0x12   :  { %2207 = vmatprep.subr.bf16.mxu0 %v2206_v40  ;;  %v2258_v15 = vpack.c.bf16 %v391_v14, %v390_v13  ;;  %v1721_v17 = vld [vmem:[%s2992_s3 + $0xf8] sm:$0xff]  ;;  %vm2735_vm2 = vmpackc.low %vm484_vm1, %vm484_vm1  ;;  %v1723_v39 = vld [vmem:[%s2994_s4 + $0x1] ss:$0 sm:$0xff] }
  0x13   :  { %2181 = vmatpush3.bf16.msra.mxu1 %v2178_v16  ;;  %v1720_v16 = vld [vmem:[%s2992_s3 + $0xf0] sm:$0xff]  ;;  %s2468_s3 = smov 96   ;;  %v2764_v7 = vld [vmem:[%s2996_s2] sm:$0xff] }
  0x14   :  { %2183 = vmatprep.subr.bf16.mxu1 %v2182_v19  ;;  %v2226_v18 = vpack.c.bf16 %v1721_v17, %v1720_v16 }
  0x15   :  { %2209 = vmatpush3.bf16.msra.mxu0 %v2206_v40 }
  0x16   :  { %2211 = vmatprep.subr.bf16.mxu0 %v2210_v43 }
  0x17   :  { %2185 = vmatpush3.bf16.msra.mxu1 %v2182_v19  ;;  %v1705_v19 = vld [vmem:[%s2994_s4] ss:$0 sm:$0xff]  ;;  %s2480_s4 = smov 16  }
  0x18   :  { %2187 = vmatprep.subr.bf16.mxu1 %v2186_v22 }
  0x19   :  { %2213 = vmatpush3.bf16.msra.mxu0 %v2210_v43 }
  0x1a   :  { %2215 = vmatprep.subr.bf16.mxu0 %v2214_v46 }
  0x1b   :  { %2189 = vmatpush3.bf16.msra.mxu1 %v2186_v22 }
  0x1c   :  { %2191 = vmatprep.subr.bf16.mxu1 %v2190_v25 }
  0x1d   :  { %2217 = vmatpush3.bf16.msra.mxu0 %v2214_v46 }
  0x1e   :  { %2219 = vmatprep.subr.bf16.mxu0 %v2218_v49 }
  0x1f   :  { %2193 = vmatpush3.bf16.msra.mxu1 %v2190_v25 }
  0x20   :  { %2195 = vmatprep.subr.bf16.mxu1 %v2194_v28 }
  0x21   :  { %2221 = vmatpush3.bf16.msra.mxu0 %v2218_v49 }
  0x22   :  { %2223 = vmatprep.subr.bf16.mxu0 %v2222_v52 }
  0x23   :  { %2197 = vmatpush3.bf16.msra.mxu1 %v2194_v28 }
  0x24   :  { %2231 = vmatprep.subr.bf16.mxu1 %v2230_v31 }
  0x25   :  { %2225 = vmatpush3.bf16.msra.mxu0 %v2222_v52 }
  0x26   :  { %2227 = vmatprep.subr.bf16.mxu0 %v2226_v18 }
  0x29   :  { %2229 = vmatpush3.bf16.msra.mxu0 %v2226_v18 }
  0xdb   :  { %v1919_v53 = vpop.f32.mrb[0].mxu0 }
  0xdc   :  { %v121_v56 = vpop.f32.mrb[1].mxu0  ;;  %v131_v58 = vadd.f32 %v1919_v53, %v2560_v1 }
  0xdd   :  { %v130_v57 = vadd.f32 %v121_v56, %v2555_v0 }
  0xdf   :  { %1952 = vmatprep.mubr.f32.mxu1 %v130_v57 }
  0xe0   :  { %1953 = vmatmul.mubr.f32.vlgmr.msra.gmra.mrb[0].mxu1 %v131_v58 }
  0xe1   :  { %2233 = vmatpush3.bf16.msra.mxu1 %v2230_v31  ;;  %2022 = vmatprep.mubr.f32.mxu1 %v2555_v0 }
  0xe2   :  { %2235 = vmatprep.subr.bf16.mxu1 %v2234_v59 }
  0xe5   :  { %2237 = vmatpush3.bf16.msra.mxu1 %v2234_v59 }
  0xe6   :  { %2239 = vmatprep.subr.bf16.mxu1 %v2238_v62 }
  0xe9   :  { %2241 = vmatpush3.bf16.msra.mxu1 %v2238_v62 }
  0xea   :  { %2243 = vmatprep.subr.bf16.mxu1 %v2242_v3 }
  0xed   :  { %2245 = vmatpush3.bf16.msra.mxu1 %v2242_v3 }
  0xee   :  { %2247 = vmatprep.subr.bf16.mxu1 %v2246_v6 }
  0xf1   :  { %2249 = vmatpush3.bf16.msra.mxu1 %v2246_v6  ;;  %v2759_v6 = vld [vmem:[%s2996_s2 + $0x8] sm:$0xff]  ;;  %s2471_s2 = smov 120  }
  0xf2   :  { %2251 = vmatprep.subr.bf16.mxu1 %v2250_v9 }
  0xf5   :  { %2253 = vmatpush3.bf16.msra.mxu1 %v2250_v9 }
  0xf6   :  { %2255 = vmatprep.subr.bf16.mxu1 %v2254_v12 }
  0xf9   :  { %2257 = vmatpush3.bf16.msra.mxu1 %v2254_v12 }
  0xfa   :  { %2259 = vmatprep.subr.bf16.mxu1 %v2258_v15 }
  0xfd   :  { %2261 = vmatpush3.bf16.msra.mxu1 %v2258_v15 }
 0x100   :  { %2023 = vmatmul.mubr.f32.vlgmr.msra.gmra.mrb[2].mxu1 %v2560_v1 }
 0x1b3   :  { %v1954_v20 = vpop.f32.mrb[0].mxu1 }
 0x1b4   :  { %v227_v21 = vadd.f32 %v1954_v20, %v1705_v19  ;;  %v221_v22 = vpop.f32.mrb[1].mxu1 }
 0x1b5   :  { %v222_v23 = vadd.f32 %v1705_v19, %v221_v22 }
 0x1b6   :  { %v231_v25 = vmax.f32 %v227_v21, 0.0 }
 0x1b7   :  { %v230_v24 = vmax.f32 %v222_v23, 0.0 }
 0x1b9   :  { %1987 = vmatprep.mubr.f32.mxu0 %v230_v24 }
 0x1ba   :  { %1988 = vmatmul.mubr.f32.vlgmr.msra.gmra.mrb[2].mxu0 %v231_v25 }
 0x1d3   :  { %v2024_v27 = vpop.f32.mrb[2].mxu1 }
 0x1d4   :  { %v471_v28 = vadd.f32 %v2024_v27, %v1726_v26  ;;  %v465_v29 = vpop.f32.mrb[3].mxu1 }
 0x1d5   :  { %v466_v30 = vadd.f32 %v1726_v26, %v465_v29 }
 0x1d6   :  { %v2743_v38 = vmul.f32 0.35355338, %v471_v28 }
 0x1d7   :  { %v2726_v31 = vpack.i.bf16 %v471_v28, %v466_v30  ;;  %v2728_v32 = vmul.f32 0.35355338, %v466_v30 }
 0x1d9   :  { %2389 = vrot.lane.b32.xlu0 %v2726_v31, %s2468_s3  ;;  %2029 = vmatprep.mubr.msk.f32.mxu0 %vm484_vm1, %v2728_v32 }
 0x24b   :  { %v2390_v33 = vpop.permute.xlu0 %2389 }
 0x24c   :  { %v2392_v34 = vunpack.i.h.bf16 %v2390_v33  ;;  %v2391_v35 = vunpack.i.l.bf16 %v2390_v33 }
 0x24e   :  { %v2262_v37 = vpack.c.bf16 %v2392_v34, %v2391_v35 }
 0x250   :  { %2264 = vmatprep.subr.msk.bf16.mxu0 %vm2735_vm2, %v2262_v37 }
 0x251   :  { %2267 = vmatpush3.bf16.xpose.msk.msra.mxu0 %vm2735_vm2, %v2262_v37 }
 0x258   :  { %2030 = vmatmul.mubr.msk.f32.vlgmr.msra.gmra.mrb[4].mxu0 %vm484_vm1, %v2743_v38 }
 0x28d   :  { %v1989_v40 = vpop.f32.mrb[2].mxu0 }
 0x28e   :  { %v329_v41 = vadd.f32 %v1989_v40, %v1723_v39  ;;  %v323_v42 = vpop.f32.mrb[3].mxu0 }
 0x28f   :  { %v324_v43 = vadd.f32 %v1723_v39, %v323_v42 }
 0x290   :  { %v333_v44 = vadd.f32 %v329_v41, %v2560_v1 }
 0x291   :  { %v332_v45 = vadd.f32 %v324_v43, %v2555_v0 }
 0x293   :  { %v336_v46 = vadd.f32 %v333_v44, %v332_v45 }
 0x295   :  { %v337_v47 = vrot.slane %v336_v46, 4 }
 0x297   :  { %v338_v48 = vadd.f32 %v337_v47, %v336_v46 }
 0x299   :  { %v339_v49 = vrot.slane %v338_v48, 2 }
 0x29b   :  { %v340_v50 = vadd.f32 %v339_v49, %v338_v48 }
 0x29d   :  { %v341_v51 = vrot.slane %v340_v50, 1 }
 0x29f   :  { %v342_v52 = vadd.f32 %v341_v51, %v340_v50 }
 0x2a1   :  { %v343_v53 = vmul.f32 0.0625, %v342_v52 }
 0x2a3   :  { %v344_v54 = vsub.f32 %v332_v45, %v343_v53  ;;  %v345_v55 = vsub.f32 %v333_v44, %v343_v53 }
 0x2a5   :  { %v346_v56 = vmul.f32 %v344_v54, %v344_v54  ;;  %v347_v57 = vmul.f32 %v345_v55, %v345_v55 }
 0x2a7   :  { %v348_v58 = vadd.f32 %v347_v57, %v346_v56 }
 0x2a9   :  { %v349_v59 = vrot.slane %v348_v58, 4 }
 0x2ab   :  { %v350_v60 = vadd.f32 %v349_v59, %v348_v58 }
 0x2ad   :  { %v351_v61 = vrot.slane %v350_v60, 2 }
 0x2af   :  { %v352_v62 = vadd.f32 %v351_v61, %v350_v60 }
 0x2b1   :  { %v353_v1 = vrot.slane %v352_v62, 1 }
 0x2b3   :  { %v354_v63 = vadd.f32 %v353_v1, %v352_v62 }
 0x2b5   :  { %v355_v0 = vmul.f32 0.0625, %v354_v63 }
 0x2b7   :  { %v356_v2 = vadd.f32 1e-05, %v355_v0 }
 0x2b9   :  { %2428 = vrsqrt.f32 %v356_v2 }
 0x2c3   :  { %v2429_v3 = vpop.eup %2428 }
 0x2c4   :  { %v2752_v4 = vmul.f32 %v2429_v3, %v344_v54  ;;  %v2754_v5 = vmul.f32 %v2429_v3, %v345_v55 }
 0x32b   :  { %v2031_v8 = vpop.f32.mrb[4].mxu0 }
 0x32c   :  { %v567_v9 = vadd.f32 %v2031_v8, %v2759_v6  ;;  %v561_v10 = vpop.f32.mrb[5].mxu0 }
 0x32d   :  { %v562_v11 = vadd.f32 %v561_v10, %v2764_v7 }
 0x32e   :  { %v573_v12 = vsel %vm48_vm0, %v567_v9, -inf }
 0x32f   :  { %574 = vmax.xlane.f32.xlu1 %v573_v12  ;;  %v570_v13 = vsel %vm48_vm0, %v562_v11, -inf }
 0x330   :  { %571 = vmax.xlane.f32.xlu0 %v570_v13 }
 0x340   :  { %2394 = vrot.lane.b32.xlu1 %v2726_v31, %s2469_s29 }
 0x344   :  { %2399 = vrot.lane.b32.xlu1 %v2726_v31, %s2470_s30 }
 0x346   :  { %681 = vrot.lane.b32.xlu0 %v2743_v38, %s2471_s2 }
 0x3bc   :  { %v575_v14 = vpop.xlane.xlu1 %574 }
 0x3bd   :  { %v577_v15 = vsub.f32 %v567_v9, %v575_v14  ;;  %v572_v16 = vpop.xlane.xlu0 %571 }
 0x3be   :  { %v576_v17 = vsub.f32 %v562_v11, %v572_v16 }
 0x3bf   :  { %v580_v18 = vmul.f32 1.442695, %v577_v15 }
 0x3c0   :  { %v578_v19 = vmul.f32 1.442695, %v576_v17  ;;  %v2395_v20 = vpop.permute.xlu1 %2394 }
 0x3c1   :  { %2430 = vpow2.f32 %v580_v18  ;;  %v2397_v21 = vunpack.i.h.bf16 %v2395_v20  ;;  %v2396_v22 = vunpack.i.l.bf16 %v2395_v20  ;;  %v682_v43 = vpop.permute.xlu0 %681 }
 0x3c2   :  { %2432 = vpow2.f32 %v578_v19 }
 0x3c3   :  { %v2268_v23 = vpack.c.bf16 %v2397_v21, %v2396_v22 }
 0x3c4   :  { %v2400_v24 = vpop.permute.xlu1 %2399 }
 0x3c5   :  { %v2402_v25 = vunpack.i.h.bf16 %v2400_v24  ;;  %v2401_v26 = vunpack.i.l.bf16 %v2400_v24  ;;  %2269 = vmatprep.subr.bf16.mxu0 %v2268_v23 }
 0x3c6   :  { %2271 = vmatpush3.bf16.msra.mxu0 %v2268_v23 }
 0x3c7   :  { %v2272_v27 = vpack.c.bf16 %v2402_v25, %v2401_v26 }
 0x3c9   :  { %2274 = vmatprep.subr.msk.bf16.mxu0 %vm2735_vm2, %v2272_v27 }
 0x3cb   :  { %v2431_v28 = vpop.eup %2430 }
 0x3cc   :  { %v585_v29 = vsel %vm48_vm0, %v2431_v28, 0.0  ;;  %v2433_v30 = vpop.eup %2432 }
 0x3cd   :  { %586 = vadd.xlane.f32.xlu1 %v585_v29  ;;  %v582_v33 = vsel %vm48_vm0, %v2433_v30, 0.0 }
 0x3d1   :  { %583 = vadd.xlane.f32.xlu1 %v582_v33 }
 0x3e2   :  { %679 = vrot.lane.b32.xlu1 %v2728_v32, %s2471_s2 }
 0x45a   :  { %v587_v34 = vpop.xlane.xlu1 %586 }
 0x45b   :  { %2434 = vrcp.f32 %v587_v34 }
 0x45e   :  { %v584_v35 = vpop.xlane.xlu1 %583 }
 0x45f   :  { %2436 = vrcp.f32 %v584_v35 }
 0x462   :  { %v680_v42 = vpop.permute.xlu1 %679 }
 0x465   :  { %v2435_v37 = vpop.eup %2434 }
 0x466   :  { %v591_v41 = vmul.f32 %v2435_v37, %v2431_v28 }
 0x469   :  { %v2437_v39 = vpop.eup %2436 }
 0x46a   :  { %v590_v40 = vmul.f32 %v2437_v39, %v2433_v30 }
 0x46c   :  { %2036 = vmatprep.mubr.msk.f32.mxu0 %vm48_vm0, %v590_v40 }
 0x46d   :  { %2037 = vmatmul.mubr.msk.f32.vlgmr.msra.gmra.mrb[6].mxu0 %vm48_vm0, %v591_v41 }
 0x46e   :  { %2277 = vmatpush3.bf16.xpose.msk.msra.mxu0 %vm2735_vm2, %v2272_v27  ;;  %2043 = vmatprep.mubr.msk.f32.mxu0 %vm484_vm1, %v680_v42 }
 0x475   :  { %2044 = vmatmul.mubr.msk.f32.vlgmr.msra.gmra.mrb[8].mxu0 %vm484_vm1, %v682_v43 }
 0x540   :  { %v2784_v44 = vpop.f32.mrb[6].mxu0 }
 0x541   :  { %v2786_v45 = vpop.f32.mrb[7].mxu0 }
 0x548   :  { %v2045_v46 = vpop.f32.mrb[8].mxu0 }
 0x549   :  { %v767_v47 = vadd.f32 %v2045_v46, %v2759_v6  ;;  %v761_v48 = vpop.f32.mrb[9].mxu0 }
 0x54a   :  { %v762_v49 = vadd.f32 %v761_v48, %v2764_v7 }
 0x54b   :  { %v773_v50 = vsel %vm48_vm0, %v767_v47, -inf }
 0x54c   :  { %774 = vmax.xlane.f32.xlu0 %v773_v50  ;;  %v770_v51 = vsel %vm48_vm0, %v762_v49, -inf }
 0x54d   :  { %771 = vmax.xlane.f32.xlu1 %v770_v51 }
 0x55e   :  { %2404 = vrot.lane.b32.xlu1 %v2726_v31, %s2472_s14 }
 0x562   :  { %2409 = vrot.lane.b32.xlu0 %v2726_v31, %s2473_s15  ;;  %2414 = vrot.lane.b32.xlu1 %v2726_v31, %s2474_s16 }
 0x566   :  { %1079 = vrot.lane.b32.xlu0 %v2728_v32, %s2475_s1  ;;  %879 = vrot.lane.b32.xlu1 %v2728_v32, %s2476_s17 }
 0x5d9   :  { %v775_v52 = vpop.xlane.xlu0 %774 }
 0x5da   :  { %v777_v53 = vsub.f32 %v767_v47, %v775_v52  ;;  %v772_v54 = vpop.xlane.xlu1 %771 }
 0x5db   :  { %v776_v55 = vsub.f32 %v762_v49, %v772_v54 }
 0x5dc   :  { %v780_v56 = vmul.f32 1.442695, %v777_v53 }
 0x5dd   :  { %v778_v57 = vmul.f32 1.442695, %v776_v55  ;;  %v2410_v58 = vpop.permute.xlu0 %2409 }
 0x5de   :  { %2438 = vpow2.f32 %v780_v56  ;;  %v2405_v59 = vpop.permute.xlu1 %2404  ;;  %v2412_v60 = vunpack.i.h.bf16 %v2410_v58  ;;  %v2411_v61 = vunpack.i.l.bf16 %v2410_v58 }
 0x5df   :  { %v2407_v62 = vunpack.i.h.bf16 %v2405_v59  ;;  %v2406_v1 = vunpack.i.l.bf16 %v2405_v59  ;;  %2440 = vpow2.f32 %v778_v57 }
 0x5e0   :  { %v2282_v0 = vpack.c.bf16 %v2412_v60, %v2411_v61 }
 0x5e1   :  { %v2278_v63 = vpack.c.bf16 %v2407_v62, %v2406_v1  ;;  %v1080_v20 = vpop.permute.xlu0 %1079 }
 0x5e2   :  { %v2415_v9 = vpop.permute.xlu1 %2414 }
 0x5e3   :  { %2279 = vmatprep.subr.bf16.mxu0 %v2278_v63  ;;  %v2417_v15 = vunpack.i.h.bf16 %v2415_v9  ;;  %v2416_v16 = vunpack.i.l.bf16 %v2415_v9 }
 0x5e4   :  { %2281 = vmatpush3.bf16.msra.mxu0 %v2278_v63 }
 0x5e5   :  { %2284 = vmatprep.subr.msk.bf16.mxu0 %vm2735_vm2, %v2282_v0  ;;  %v2292_v19 = vpack.c.bf16 %v2417_v15, %v2416_v16 }
 0x5e6   :  { %v880_v10 = vpop.permute.xlu1 %879 }
 0x5e8   :  { %v2439_v32 = vpop.eup %2438 }
 0x5e9   :  { %v785_v2 = vsel %vm48_vm0, %v2439_v32, 0.0  ;;  %v2441_v3 = vpop.eup %2440 }
 0x5ea   :  { %786 = vadd.xlane.f32.xlu1 %v785_v2  ;;  %v782_v8 = vsel %vm48_vm0, %v2441_v3, 0.0 }
 0x5ee   :  { %783 = vadd.xlane.f32.xlu1 %v782_v8 }
 0x5ff   :  { %881 = vrot.lane.b32.xlu1 %v2743_v38, %s2476_s17 }
 0x603   :  { %1081 = vrot.lane.b32.xlu1 %v2743_v38, %s2475_s1 }
 0x677   :  { %v787_v11 = vpop.xlane.xlu1 %786 }
 0x678   :  { %2442 = vrcp.f32 %v787_v11 }
 0x67b   :  { %v784_v12 = vpop.xlane.xlu1 %783 }
 0x67c   :  { %2444 = vrcp.f32 %v784_v12 }
 0x67f   :  { %v882_v38 = vpop.permute.xlu1 %881 }
 0x682   :  { %v2443_v13 = vpop.eup %2442 }
 0x683   :  { %v791_v18 = vmul.f32 %v2443_v13, %v2439_v32  ;;  %v1082_v21 = vpop.permute.xlu1 %1081 }
 0x686   :  { %v2445_v14 = vpop.eup %2444 }
 0x687   :  { %v790_v17 = vmul.f32 %v2445_v14, %v2441_v3 }
 0x689   :  { %2050 = vmatprep.mubr.msk.f32.mxu0 %vm48_vm0, %v790_v17  ;;  %v1310_v17 = vld [vmem:[%s2997_s7] sm:$0xff] }
 0x68a   :  { %2051 = vmatmul.mubr.msk.f32.vlgmr.msra.gmra.mrb[10].mxu0 %vm48_vm0, %v791_v18  ;;  %v1311_v18 = vld [vmem:[%s2997_s7 + $0x8] sm:$0xff] }
 0x68b   :  { %2287 = vmatpush3.bf16.xpose.msk.msra.mxu0 %vm2735_vm2, %v2282_v0  ;;  %2057 = vmatprep.mubr.msk.f32.mxu0 %vm484_vm1, %v880_v10 }
 0x68c   :  { %2294 = vmatprep.subr.msk.bf16.mxu0 %vm2735_vm2, %v2292_v19 }
 0x692   :  { %2058 = vmatmul.mubr.msk.f32.vlgmr.msra.gmra.mrb[12].mxu0 %vm484_vm1, %v882_v38  ;;  %v1312_v38 = vld [vmem:[%s2997_s7 + $0x10] sm:$0xff] }
 0x693   :  { %2297 = vmatpush3.bf16.xpose.msk.msra.mxu0 %vm2735_vm2, %v2292_v19  ;;  %2071 = vmatprep.mubr.msk.f32.mxu0 %vm484_vm1, %v1080_v20  ;;  %v2302_v19 = vpack.c.bf16 %v1311_v18, %v1310_v17  ;;  %v1313_v20 = vld [vmem:[%s2997_s7 + $0x18] sm:$0xff] }
 0x694   :  { %v1770_v17 = vld [vmem:[%s2998_s9 + $0xd8] sm:$0xff] }
 0x69a   :  { %2072 = vmatmul.mubr.msk.f32.vlgmr.msra.gmra.mrb[14].mxu0 %vm484_vm1, %v1082_v21  ;;  %v2306_v21 = vpack.c.bf16 %v1313_v20, %v1312_v38  ;;  %v1772_v38 = vld [vmem:[%s2998_s9 + $0xe8] sm:$0xff] }
 0x75d   :  { %v2052_v22 = vpop.f32.mrb[10].mxu0 }
 0x75e   :  { %v870_v23 = vpop.f32.mrb[11].mxu0 }
 0x765   :  { %v2059_v24 = vpop.f32.mrb[12].mxu0 }
 0x766   :  { %v967_v25 = vadd.f32 %v2059_v24, %v2759_v6  ;;  %v961_v26 = vpop.f32.mrb[13].mxu0 }
 0x767   :  { %v962_v27 = vadd.f32 %v961_v26, %v2764_v7 }
 0x768   :  { %v973_v28 = vsel %vm48_vm0, %v967_v25, -inf }
 0x769   :  { %974 = vmax.xlane.f32.xlu1 %v973_v28  ;;  %v970_v29 = vsel %vm48_vm0, %v962_v27, -inf }
 0x76a   :  { %971 = vmax.xlane.f32.xlu0 %v970_v29 }
 0x76d   :  { %v2073_v36 = vpop.f32.mrb[14].mxu0 }
 0x76e   :  { %v1161_v30 = vpop.f32.mrb[15].mxu0  ;;  %v1167_v34 = vadd.f32 %v2073_v36, %v2759_v6 }
 0x76f   :  { %v1162_v33 = vadd.f32 %v1161_v30, %v2764_v7 }
 0x770   :  { %v1173_v37 = vsel %vm48_vm0, %v1167_v34, -inf }
 0x771   :  { %v1170_v35 = vsel %vm48_vm0, %v1162_v33, -inf }
 0x772   :  { %1171 = vmax.xlane.f32.xlu0 %v1170_v35 }
 0x776   :  { %1174 = vmax.xlane.f32.xlu0 %v1173_v37 }
 0x7f6   :  { %v975_v39 = vpop.xlane.xlu1 %974 }
 0x7f7   :  { %v977_v40 = vsub.f32 %v967_v25, %v975_v39  ;;  %v972_v41 = vpop.xlane.xlu0 %971 }
 0x7f8   :  { %v976_v42 = vsub.f32 %v962_v27, %v972_v41  ;;  %v1451_v41 = vld [vmem:[%s2998_s9] sm:$0xff] }
 0x7f9   :  { %v980_v43 = vmul.f32 1.442695, %v977_v40 }
 0x7fa   :  { %v978_v46 = vmul.f32 1.442695, %v976_v42 }
 0x7fb   :  { %2446 = vpow2.f32 %v980_v43  ;;  %v1454_v43 = vld [vmem:[%s2998_s9 + $0x18] sm:$0xff] }
 0x7fc   :  { %2448 = vpow2.f32 %v978_v46 }
 0x7ff   :  { %v1172_v47 = vpop.xlane.xlu0 %1171 }
 0x800   :  { %v1176_v48 = vsub.f32 %v1162_v33, %v1172_v47  ;;  %v1455_v47 = vld [vmem:[%s2998_s9 + $0x20] sm:$0xff] }
 0x802   :  { %v1178_v49 = vmul.f32 1.442695, %v1176_v48  ;;  %v1456_v48 = vld [vmem:[%s2998_s9 + $0x28] sm:$0xff] }
 0x803   :  { %v1175_v7 = vpop.xlane.xlu0 %1174 }
 0x804   :  { %2450 = vpow2.f32 %v1178_v49  ;;  %v1177_v6 = vsub.f32 %v1167_v34, %v1175_v7  ;;  %v2318_v49 = vpack.c.bf16 %v1456_v48, %v1455_v47  ;;  %v1457_v7 = vld [vmem:[%s2998_s9 + $0x30] sm:$0xff] }
 0x805   :  { %v2447_v50 = vpop.eup %2446 }
 0x806   :  { %v2449_v51 = vpop.eup %2448  ;;  %v1180_v52 = vmul.f32 1.442695, %v1177_v6  ;;  %v985_v53 = vsel %vm48_vm0, %v2447_v50, 0.0  ;;  %v1458_v6 = vld [vmem:[%s2998_s9 + $0x38] sm:$0xff] }
 0x807   :  { %986 = vadd.xlane.f32.xlu0 %v985_v53  ;;  %v982_v54 = vsel %vm48_vm0, %v2449_v51, 0.0 }
 0x808   :  { %2452 = vpow2.f32 %v1180_v52  ;;  %983 = vadd.xlane.f32.xlu1 %v982_v54  ;;  %v1460_v52 = vld [vmem:[%s2998_s9 + $0x48] sm:$0xff]  ;;  %v1461_v54 = vld [vmem:[%s2998_s9 + $0x50] sm:$0xff] }
 0x80e   :  { %v2451_v55 = vpop.eup %2450 }
 0x80f   :  { %v1182_v56 = vsel %vm48_vm0, %v2451_v55, 0.0 }
 0x810   :  { %1183 = vadd.xlane.f32.xlu1 %v1182_v56 }
 0x812   :  { %v2453_v57 = vpop.eup %2452 }
 0x813   :  { %v1185_v58 = vsel %vm48_vm0, %v2453_v57, 0.0 }
 0x814   :  { %1186 = vadd.xlane.f32.xlu0 %v1185_v58  ;;  %v1464_v58 = vld [vmem:[%s2998_s9 + $0x68] sm:$0xff] }
 0x821   :  { %2419 = vrot.lane.b32.xlu1 %v2726_v31, %s2477_s18 }
 0x825   :  { %1281 = vrot.lane.b32.xlu1 %v870_v23, %s2478_s19 }
 0x829   :  { %1283 = vrot.lane.b32.xlu1 %v2052_v22, %s2478_s19 }
 0x82a   :  { %2424 = vrot.lane.b32.xlu0 %v2726_v31, %s2479_s20 }
 0x894   :  { %v987_v60 = vpop.xlane.xlu0 %986 }
 0x895   :  { %v984_v59 = vpop.xlane.xlu1 %983 }
 0x896   :  { %2454 = vrcp.f32 %v984_v59 }
 0x897   :  { %2456 = vrcp.f32 %v987_v60  ;;  %v1465_v60 = vld [vmem:[%s2998_s9 + $0x70] sm:$0xff] }
 0x89d   :  { %v1184_v61 = vpop.xlane.xlu1 %1183 }
 0x89e   :  { %2458 = vrcp.f32 %v1184_v61  ;;  %v1466_v61 = vld [vmem:[%s2998_s9 + $0x78] sm:$0xff] }
 0x8a0   :  { %v2455_v62 = vpop.eup %2454 }
 0x8a1   :  { %v2420_v1 = vpop.permute.xlu1 %2419  ;;  %v1187_v63 = vpop.xlane.xlu0 %1186  ;;  %v990_v0 = vmul.f32 %v2455_v62, %v2449_v51  ;;  %v1459_v51 = vld [vmem:[%s2998_s9 + $0x40] sm:$0xff]  ;;  %v2338_v62 = vpack.c.bf16 %v1466_v61, %v1465_v60 }
 0x8a2   :  { %v2422_v32 = vunpack.i.h.bf16 %v2420_v1  ;;  %v2421_v2 = vunpack.i.l.bf16 %v2420_v1  ;;  %2460 = vrcp.f32 %v1187_v63  ;;  %v2457_v8 = vpop.eup %2456  ;;  %v2326_v53 = vpack.c.bf16 %v1460_v52, %v1459_v51  ;;  %v1759_v1 = vld [vmem:[%s2998_s9 + $0x80] sm:$0xff]  ;;  %v1760_v63 = vld [vmem:[%s2998_s9 + $0x88] sm:$0xff] }
 0x8a3   :  { %2064 = vmatprep.mubr.msk.f32.mxu1 %vm48_vm0, %v990_v0  ;;  %v991_v12 = vmul.f32 %v2457_v8, %v2447_v50  ;;  %v2322_v50 = vpack.c.bf16 %v1458_v6, %v1457_v7  ;;  %v1761_v0 = vld [vmem:[%s2998_s9 + $0x90] sm:$0xff]  ;;  %v1763_v8 = vld [vmem:[%s2998_s9 + $0xa0] sm:$0xff] }
 0x8a4   :  { %v2288_v3 = vpack.c.bf16 %v2422_v32, %v2421_v2  ;;  %v2342_v32 = vpack.c.bf16 %v1760_v63, %v1759_v1  ;;  %v1762_v2 = vld [vmem:[%s2998_s9 + $0x98] sm:$0xff]  ;;  %v1724_v52 = vld [vmem:[%s3000_s11] ss:$0 sm:$0xff]  ;;  %v1757_v60 = vld [vmem:[%s3001_s12 + $0x1] ss:$0 sm:$0xff] }
 0x8a5   :  { %v2425_v9 = vpop.permute.xlu0 %2424  ;;  %v1282_v26 = vpop.permute.xlu1 %1281 }
 0x8a6   :  { %v2427_v10 = vunpack.i.h.bf16 %v2425_v9  ;;  %v2426_v31 = vunpack.i.l.bf16 %v2425_v9  ;;  %2289 = vmatprep.subr.bf16.mxu1 %v2288_v3  ;;  %v1303_v36 = vsel %vm484_vm1, %v2786_v45, %v1282_v26  ;;  %v1452_v45 = vld [vmem:[%s2998_s9 + $0x8] sm:$0xff] }
 0x8a7   :  { %2291 = vmatpush3.bf16.msra.mxu1 %v2288_v3  ;;  %v2310_v42 = vpack.c.bf16 %v1452_v45, %v1451_v41  ;;  %v2346_v3 = vpack.c.bf16 %v1762_v2, %v1761_v0  ;;  %v1764_v9 = vld [vmem:[%s2998_s9 + $0xa8] sm:$0xff] }
 0x8a8   :  { %v2459_v11 = vpop.eup %2458  ;;  %v2298_v13 = vpack.c.bf16 %v2427_v10, %v2426_v31  ;;  %v2350_v10 = vpack.c.bf16 %v1764_v9, %v1763_v8  ;;  %v1765_v31 = vld [vmem:[%s2998_s9 + $0xb0] sm:$0xff]  ;;  %v2466_v26 = vld [vmem:[%s2990_s0 + $0x8] sm:$0xff]  ;;  %v1758_v9 = vld [vmem:[%s3002_s10] ss:$0 sm:$0xff] }
 0x8a9   :  { %v1190_v14 = vmul.f32 %v2459_v11, %v2451_v55  ;;  %v1284_v27 = vpop.permute.xlu1 %1283  ;;  %2311 = vmatprep.subr.bf16.mxu0 %v2310_v42  ;;  %v1462_v55 = vld [vmem:[%s2998_s9 + $0x58] sm:$0xff] }
 0x8aa   :  { %2065 = vmatmul.mubr.msk.f32.vlgmr.msra.gmra.mrb[4].mxu1 %vm48_vm0, %v991_v12  ;;  %2299 = vmatprep.subr.bf16.mxu1 %v2298_v13  ;;  %v1304_v33 = vsel %vm484_vm1, %v2784_v44, %v1284_v27  ;;  %v1453_v44 = vld [vmem:[%s2998_s9 + $0x10] sm:$0xff]  ;;  %v2330_v56 = vpack.c.bf16 %v1462_v55, %v1461_v54  ;;  %v1766_v11 = vld [vmem:[%s2998_s9 + $0xb8] sm:$0xff]  ;;  %v1756_v54 = vld [vmem:[%s3000_s11 + $0x1] ss:$0 sm:$0xff] }
 0x8ab   :  { %2301 = vmatpush3.bf16.msra.mxu1 %v2298_v13  ;;  %2078 = vmatprep.mubr.msk.f32.mxu1 %vm48_vm0, %v1190_v14  ;;  %v2314_v46 = vpack.c.bf16 %v1454_v43, %v1453_v44  ;;  %v2354_v12 = vpack.c.bf16 %v1766_v11, %v1765_v31  ;;  %v1767_v13 = vld [vmem:[%s2998_s9 + $0xc0] sm:$0xff]  ;;  %v1768_v14 = vld [vmem:[%s2998_s9 + $0xc8] sm:$0xff] }
 0x8ac   :  { %v2461_v15 = vpop.eup %2460  ;;  %2303 = vmatprep.subr.bf16.mxu1 %v2302_v19  ;;  %2313 = vmatpush3.bf16.msra.mxu0 %v2310_v42 }
 0x8ad   :  { %v1191_v16 = vmul.f32 %v2461_v15, %v2453_v57  ;;  %2315 = vmatprep.subr.bf16.mxu0 %v2314_v46  ;;  %v1463_v57 = vld [vmem:[%s2998_s9 + $0x60] sm:$0xff]  ;;  %v2358_v15 = vpack.c.bf16 %v1768_v14, %v1767_v13 }
 0x8ae   :  { %v2334_v59 = vpack.c.bf16 %v1464_v58, %v1463_v57  ;;  %v366_v57 = vmul.f32 %v1724_v52, %v2752_v4  ;;  %v367_v58 = vmul.f32 %v1724_v52, %v2754_v5  ;;  %v1773_v4 = vld [vmem:[%s2998_s9 + $0xf0] sm:$0xff]  ;;  %v1774_v5 = vld [vmem:[%s2998_s9 + $0xf8] sm:$0xff] }
 0x8af   :  { %2079 = vmatmul.mubr.msk.f32.vlgmr.msra.gmra.mrb[6].mxu1 %vm48_vm0, %v1191_v16  ;;  %v1769_v16 = vld [vmem:[%s2998_s9 + $0xd0] sm:$0xff]  ;;  %v2370_v8 = vpack.c.bf16 %v1774_v5, %v1773_v4 }
 0x8b0   :  { %2305 = vmatpush3.bf16.msra.mxu1 %v2302_v19  ;;  %2317 = vmatpush3.bf16.msra.mxu0 %v2314_v46  ;;  %v2362_v18 = vpack.c.bf16 %v1770_v17, %v1769_v16  ;;  %v1771_v19 = vld [vmem:[%s2998_s9 + $0xe0] sm:$0xff] }
 0x8b1   :  { %2307 = vmatprep.subr.bf16.mxu1 %v2306_v21  ;;  %2319 = vmatprep.subr.bf16.mxu0 %v2318_v49  ;;  %v2366_v20 = vpack.c.bf16 %v1772_v38, %v1771_v19 }
 0x8b4   :  { %2309 = vmatpush3.bf16.msra.mxu1 %v2306_v21  ;;  %2321 = vmatpush3.bf16.msra.mxu0 %v2318_v49  ;;  %v1751_v21 = vld [vmem:[%s2999_s8] ss:$0 sm:$0xff] }
 0x8b5   :  { %2323 = vmatprep.subr.bf16.mxu0 %v2322_v50  ;;  %2343 = vmatprep.subr.bf16.mxu1 %v2342_v32 }
 0x8b8   :  { %2325 = vmatpush3.bf16.msra.mxu0 %v2322_v50 }
 0x8b9   :  { %2327 = vmatprep.subr.bf16.mxu0 %v2326_v53 }
 0x8bc   :  { %2329 = vmatpush3.bf16.msra.mxu0 %v2326_v53 }
 0x8bd   :  { %2331 = vmatprep.subr.bf16.mxu0 %v2330_v56 }
 0x8c0   :  { %2333 = vmatpush3.bf16.msra.mxu0 %v2330_v56 }
 0x8c1   :  { %2335 = vmatprep.subr.bf16.mxu0 %v2334_v59 }
 0x8c4   :  { %2337 = vmatpush3.bf16.msra.mxu0 %v2334_v59  ;;  %v1725_v59 = vld [vmem:[%s3001_s12] ss:$0 sm:$0xff] }
 0x8c5   :  { %2339 = vmatprep.subr.bf16.mxu0 %v2338_v62  ;;  %v374_v1 = vadd.f32 %v1725_v59, %v366_v57  ;;  %v375_v63 = vadd.f32 %v1725_v59, %v367_v58 }
 0x8c8   :  { %2341 = vmatpush3.bf16.msra.mxu0 %v2338_v62 }
 0x97d   :  { %v2066_v22 = vpop.f32.mrb[4].mxu1 }
 0x97e   :  { %1291 = vrot.lane.b32.xlu1 %v2066_v22, %s2480_s4  ;;  %v1070_v23 = vpop.f32.mrb[5].mxu1 }
 0x97f   :  { %1289 = vrot.lane.b32.xlu0 %v1070_v23, %s2480_s4 }
 0x982   :  { %v2080_v24 = vpop.f32.mrb[6].mxu1 }
 0x983   :  { %1299 = vrot.lane.b32.xlu1 %v2080_v24, %s2481_s26  ;;  %v1270_v25 = vpop.f32.mrb[7].mxu1 }
 0x984   :  { %1297 = vrot.lane.b32.xlu0 %v1270_v25, %s2481_s26 }
 0x9f0   :  { %v1292_v28 = vpop.permute.xlu1 %1291 }
 0x9f1   :  { %v1290_v29 = vpop.permute.xlu0 %1289  ;;  %v1306_v37 = vsel %vm48_vm0, %v1304_v33, %v1292_v28  ;;  %v2467_v28 = vld [vmem:[%s2990_s0] sm:$0xff] }
 0x9f2   :  { %v1305_v34 = vsel %vm48_vm0, %v1303_v36, %v1290_v29 }
 0x9f5   :  { %v1300_v30 = vpop.permute.xlu1 %1299 }
 0x9f6   :  { %v1298_v35 = vpop.permute.xlu0 %1297  ;;  %v1309_v40 = vsel %vm1307_vm3, %v1306_v37, %v1300_v30 }
 0x9f7   :  { %v1308_v39 = vsel %vm1307_vm3, %v1305_v34, %v1298_v35 }
 0x9f8   :  { %2089 = vmatprep.mubr.msk.f32.mxu1 %vm1321_vm4, %v1308_v39 }
 0x9f9   :  { %2090 = vmatmul.mubr.msk.f32.vlgmr.msra.gmra.mrb[8].mxu1 %vm1321_vm4, %v1309_v40 }
 0x9fa   :  { %2345 = vmatpush3.bf16.msra.mxu1 %v2342_v32 }
 0x9fb   :  { %2347 = vmatprep.subr.bf16.mxu1 %v2346_v3 }
 0x9fe   :  { %2349 = vmatpush3.bf16.msra.mxu1 %v2346_v3 }
 0x9ff   :  { %2351 = vmatprep.subr.bf16.mxu1 %v2350_v10 }
 0xa02   :  { %2353 = vmatpush3.bf16.msra.mxu1 %v2350_v10 }
 0xa03   :  { %2355 = vmatprep.subr.bf16.mxu1 %v2354_v12 }
 0xa06   :  { %2357 = vmatpush3.bf16.msra.mxu1 %v2354_v12 }
 0xa07   :  { %2359 = vmatprep.subr.bf16.mxu1 %v2358_v15 }
 0xa0a   :  { %2361 = vmatpush3.bf16.msra.mxu1 %v2358_v15  ;;  %v1776_v15 = vld [vmem:[%s3002_s10 + $0x1] ss:$0 sm:$0xff] }
 0xa0b   :  { %2363 = vmatprep.subr.bf16.mxu1 %v2362_v18 }
 0xa0e   :  { %2365 = vmatpush3.bf16.msra.mxu1 %v2362_v18 }
 0xa0f   :  { %2367 = vmatprep.subr.bf16.mxu1 %v2366_v20 }
 0xa12   :  { %2369 = vmatpush3.bf16.msra.mxu1 %v2366_v20 }
 0xa13   :  { %2371 = vmatprep.subr.bf16.mxu1 %v2370_v8 }
 0xa16   :  { %2373 = vmatpush3.bf16.msra.mxu1 %v2370_v8 }
 0xacc   :  { %v2091_v22 = vpop.f32.mrb[8].mxu1 }
 0xacd   :  { %v1400_v23 = vadd.f32 %v2091_v22, %v1751_v21  ;;  %v1394_v24 = vpop.f32.mrb[9].mxu1 }
 0xace   :  { %v1395_v25 = vadd.f32 %v1751_v21, %v1394_v24 }
 0xacf   :  { %v1404_v27 = vadd.f32 %v2466_v26, %v1400_v23 }
 0xad0   :  { %v1403_v29 = vadd.f32 %v2467_v28, %v1395_v25 }
 0xad2   :  { %v1409_v36 = vadd.f32 %v1404_v27, %v1403_v29 }
 0xad4   :  { %v1410_v30 = vrot.slane %v1409_v36, 4 }
 0xad6   :  { %v1411_v33 = vadd.f32 %v1410_v30, %v1409_v36 }
 0xad8   :  { %v1412_v34 = vrot.slane %v1411_v33, 2 }
 0xada   :  { %v1413_v35 = vadd.f32 %v1412_v34, %v1411_v33 }
 0xadc   :  { %v1414_v37 = vrot.slane %v1413_v35, 1 }
 0xade   :  { %v1415_v39 = vadd.f32 %v1414_v37, %v1413_v35 }
 0xae0   :  { %v1416_v40 = vmul.f32 0.0625, %v1415_v39 }
 0xae2   :  { %v1417_v41 = vsub.f32 %v1403_v29, %v1416_v40  ;;  %v1418_v45 = vsub.f32 %v1404_v27, %v1416_v40 }
 0xae4   :  { %v1419_v42 = vmul.f32 %v1417_v41, %v1417_v41  ;;  %v1420_v44 = vmul.f32 %v1418_v45, %v1418_v45 }
 0xae6   :  { %v1421_v43 = vadd.f32 %v1420_v44, %v1419_v42 }
 0xae8   :  { %v1422_v46 = vrot.slane %v1421_v43, 4 }
 0xaea   :  { %v1423_v47 = vadd.f32 %v1422_v46, %v1421_v43  ;;  %v1779_v46 = vld [vmem:[%s3000_s11 + $0x2] ss:$0 sm:$0xff] }
 0xaec   :  { %v1424_v48 = vrot.slane %v1423_v47, 2 }
 0xaee   :  { %v1425_v49 = vadd.f32 %v1424_v48, %v1423_v47 }
 0xaf0   :  { %v1426_v7 = vrot.slane %v1425_v49, 1 }
 0xaf2   :  { %v1427_v6 = vadd.f32 %v1426_v7, %v1425_v49  ;;  %v1780_v49 = vld [vmem:[%s3001_s12 + $0x2] ss:$0 sm:$0xff] }
 0xaf4   :  { %v1428_v50 = vmul.f32 0.0625, %v1427_v6 }
 0xaf6   :  { %v1429_v51 = vadd.f32 1e-05, %v1428_v50 }
 0xaf8   :  { %2462 = vrsqrt.f32 %v1429_v51 }
 0xb02   :  { %v2463_v53 = vpop.eup %2462 }
 0xb03   :  { %v1431_v55 = vmul.f32 %v2463_v53, %v1417_v41  ;;  %v1432_v56 = vmul.f32 %v2463_v53, %v1418_v45 }
 0xb05   :  { %v1439_v61 = vmul.f32 %v1756_v54, %v1431_v55  ;;  %v1440_v62 = vmul.f32 %v1756_v54, %v1432_v56 }
 0xb07   :  { %v1447_v0 = vadd.f32 %v1757_v60, %v1439_v61  ;;  %v1448_v32 = vadd.f32 %v1757_v60, %v1440_v62 }
 0xb09   :  { %v1449_v2 = vadd.f32 %v1447_v0, %v374_v1  ;;  %v1450_v3 = vadd.f32 %v1448_v32, %v375_v63 }
 0xb0b   :  { %2124 = vmatprep.mubr.f32.mxu0 %v1449_v2 }
 0xb0c   :  { %2125 = vmatmul.mubr.f32.vlgmr.msra.gmra.mrb[16].mxu0 %v1450_v3 }
 0xbdf   :  { %v2126_v10 = vpop.f32.mrb[16].mxu0 }
 0xbe0   :  { %v1546_v31 = vadd.f32 %v2126_v10, %v1758_v9  ;;  %v1540_v11 = vpop.f32.mrb[17].mxu0 }
 0xbe1   :  { %v1541_v12 = vadd.f32 %v1758_v9, %v1540_v11 }
 0xbe2   :  { %v1550_v14 = vmax.f32 %v1546_v31, 0.0 }
 0xbe3   :  { %v1549_v13 = vmax.f32 %v1541_v12, 0.0 }
 0xbe5   :  { %2159 = vmatprep.mubr.f32.mxu1 %v1549_v13 }
 0xbe6   :  { %2160 = vmatmul.mubr.f32.vlgmr.msra.gmra.mrb[10].mxu1 %v1550_v14 }
 0xcb9   :  { %v2161_v16 = vpop.f32.mrb[10].mxu1 }
 0xcba   :  { %v1648_v17 = vadd.f32 %v2161_v16, %v1776_v15  ;;  %v1642_v18 = vpop.f32.mrb[11].mxu1 }
 0xcbb   :  { %v1643_v19 = vadd.f32 %v1776_v15, %v1642_v18 }
 0xcbc   :  { %v1652_v38 = vadd.f32 %v1648_v17, %v1450_v3 }
 0xcbd   :  { %v1651_v20 = vadd.f32 %v1643_v19, %v1449_v2 }
 0xcbf   :  { %v1657_v21 = vadd.f32 %v1652_v38, %v1651_v20 }
 0xcc1   :  { %v1658_v22 = vrot.slane %v1657_v21, 4 }
 0xcc3   :  { %v1659_v23 = vadd.f32 %v1658_v22, %v1657_v21 }
 0xcc5   :  { %v1660_v24 = vrot.slane %v1659_v23, 2 }
 0xcc7   :  { %v1661_v25 = vadd.f32 %v1660_v24, %v1659_v23 }
 0xcc9   :  { %v1662_v26 = vrot.slane %v1661_v25, 1 }
 0xccb   :  { %v1663_v27 = vadd.f32 %v1662_v26, %v1661_v25 }
 0xccd   :  { %v1664_v28 = vmul.f32 0.0625, %v1663_v27 }
 0xccf   :  { %v1665_v29 = vsub.f32 %v1651_v20, %v1664_v28  ;;  %v1666_v36 = vsub.f32 %v1652_v38, %v1664_v28 }
 0xcd1   :  { %v1667_v30 = vmul.f32 %v1665_v29, %v1665_v29  ;;  %v1668_v33 = vmul.f32 %v1666_v36, %v1666_v36 }
 0xcd3   :  { %v1669_v34 = vadd.f32 %v1668_v33, %v1667_v30 }
 0xcd5   :  { %v1670_v35 = vrot.slane %v1669_v34, 4 }
 0xcd7   :  { %v1671_v37 = vadd.f32 %v1670_v35, %v1669_v34 }
 0xcd9   :  { %v1672_v39 = vrot.slane %v1671_v37, 2 }
 0xcdb   :  { %v1673_v40 = vadd.f32 %v1672_v39, %v1671_v37 }
 0xcdd   :  { %v1674_v41 = vrot.slane %v1673_v40, 1 }
 0xcdf   :  { %v1675_v45 = vadd.f32 %v1674_v41, %v1673_v40 }
 0xce1   :  { %v1676_v42 = vmul.f32 0.0625, %v1675_v45 }
 0xce3   :  { %v1677_v44 = vadd.f32 1e-05, %v1676_v42 }
 0xce5   :  { %2464 = vrsqrt.f32 %v1677_v44 }
 0xcef   :  { %v2465_v43 = vpop.eup %2464 }
 0xcf0   :  { %v1679_v47 = vmul.f32 %v2465_v43, %v1665_v29  ;;  %v1680_v48 = vmul.f32 %v2465_v43, %v1666_v36 }
 0xcf2   :  { %v1687_v7 = vmul.f32 %v1779_v46, %v1679_v47  ;;  %v1688_v6 = vmul.f32 %v1779_v46, %v1680_v48 }
 0xcf4   :  { %v1695_v50 = vadd.f32 %v1780_v49, %v1687_v7  ;;  %v1696_v51 = vadd.f32 %v1780_v49, %v1688_v6 }
 0xcf6   :  { %1697 = vst [vmem:[%s3003_s13] sm:$0xff] %v1695_v50  ;;  %1698 = vst [vmem:[%s3003_s13 + $0x8] sm:$0xff] %v1696_v51 }

</bundles_post_ra>
